<compile_context>
chip_gen: v5e
topology: v5e:2x2
jax: 0.10.0
libtpu: 0.0.40
codegen_flags: <defaults>
</compile_context>

<pallas_src>
import functools

import numpy as np
import jax
import jax.numpy as jnp
from jax.experimental import pallas as pl
from jax.experimental.pallas import tpu as pltpu

_EPS = 1e-5


# ------------------------------ Pallas kernel -------------------------------

def _down_block_kernel(*refs, N, H, W, Cin, Cout, use_res_conv):
    """Fused DownBlock forward.

    xp_ref : (N, H+2, W*Cin)      f32   input, row-haloed, width*chan on lanes
    b1_ref : (3, W*Cin,  W*Cout)  bf16  conv1 banded weights (one per ky)
    b2_ref : (3, W*Cout, W*Cout)  bf16  conv2 banded weights
    g*/be* : (1, Cout)            f32   BatchNorm affine parameters
    bb_ref : (W*Cin, W*Cout)      bf16  path_b 1x1 conv, block-diagonal (r=True)
    bbias  : (1, W*Cout)          f32   path_b bias, pre-spread (r=True)
    o_ref  : (N*H, W*Cout)        f32   output, lane-dense, written once
    y1_ref : (N, H+2, W*Cout)     bf16  VMEM scratch: y1 with 2-row halo
    """
    if use_res_conv:
        (xp_ref, b1_ref, b2_ref, g1_ref, be1_ref, g2_ref, be2_ref,
         bb_ref, bbias_ref, o_ref, y1_ref) = refs
    else:
        (xp_ref, b1_ref, b2_ref, g1_ref, be1_ref, g2_ref, be2_ref,
         o_ref, y1_ref) = refs

    M = N * H * W
    inv_m = 1.0 / M
    LC = W * Cout                       # output lane width

    def conv3x3(src_ref, band_ref, k_lanes):
        # 3x3 'same' conv = 3 banded matmuls (one per kernel row); width taps
        # and zero-padding live inside the band matrix, so loads are full-lane.
        acc = None
        for dy in range(3):
            lhs = src_ref[:, dy:dy + H, :].reshape(N * H, k_lanes)
            part = jnp.dot(lhs.astype(jnp.bfloat16), band_ref[dy],
                           preferred_element_type=jnp.float32)
            acc = part if acc is None else acc + part
        return acc                      # (N*H, W*Cout) f32

    def spread(v):
        # (1, Cout) per-channel vector -> (1, W*Cout) lane-periodic vector.
        return jnp.concatenate([v] * W, axis=1)

    def batchnorm(y, g_ref, be_ref):
        # PyTorch-default training mode: biased batch stats over (N, H, W),
        # computed in one pass (sum and sum-of-squares).
        s2 = jnp.concatenate([jnp.sum(y, axis=0, keepdims=True),
                              jnp.sum(y * y, axis=0, keepdims=True)],
                             axis=0)                       # (2, W*Cout)
        folded = s2[:, 0:Cout]
        for x in range(1, W):                              # fold W lane-groups
            folded = folded + s2[:, x * Cout:(x + 1) * Cout]
        mean = folded[0:1] * inv_m
        var = folded[1:2] * inv_m - mean * mean
        scale = g_ref[...] * jax.lax.rsqrt(var + _EPS)
        shift = be_ref[...] - mean * scale
        return y * spread(scale) + spread(shift)

    # ---- conv1 -> BN1 (batch stats) -> ReLU.  Bias b1 omitted (cancels).
    y1 = jnp.maximum(
        batchnorm(conv3x3(xp_ref, b1_ref, W * Cin), g1_ref, be1_ref), 0.0)

    # ---- stash y1 (bf16) with a 2-row halo; zero only the halo rows.
    zero_row = jnp.zeros((N, 1, LC), jnp.bfloat16)
    y1_ref[:, 0:1, :] = zero_row
    y1_ref[:, H + 1:H + 2, :] = zero_row
    y1_ref[:, 1:H + 1, :] = y1.reshape(N, H, LC).astype(jnp.bfloat16)

    # ---- conv2 -> BN2 (batch stats), no ReLU.  Bias b2 omitted (cancels).
    y2 = batchnorm(conv3x3(y1_ref, b2_ref, LC), g2_ref, be2_ref)

    # ---- path_b: 1x1 conv (r=True) or identity (r=False), from the interior
    #      row-slab of the single padded input (no duplicate x DMA).
    xin = xp_ref[:, 1:H + 1, :].reshape(N * H, W * Cin)
    if use_res_conv:
        res = jnp.dot(xin.astype(jnp.bfloat16), bb_ref[...],
                      preferred_element_type=jnp.float32) + bbias_ref[...]
    else:
        res = xin                       # identity (requires Cin == Cout)

    # ---- single, fully lane-dense store of the final result.
    o_ref[...] = y2 + res


# --------------------------- banded-weight builders ---------------------------

def _band_3x3(w_oihw, W):
    """PyTorch OIHW (Cout,Cin,3,3) -> (3, W*Cin, W*Cout) banded matrices.

    band[ky, xo*Cin+ci, x*Cout+co] = w[co, ci, ky, xo-x+1] when |xo-x| <= 1,
    zero otherwise (the zero rows implement 'same' width padding).
    """
    Cout, Cin, KH, KW = w_oihw.shape
    xo = jnp.arange(W)[None, :, None]
    x = jnp.arange(W)[None, None, :]
    dx = jnp.arange(KW)[:, None, None]
    onehot = (xo == x + dx - 1).astype(w_oihw.dtype)          # (KW, W, W)
    band = jnp.einsum('dpx,oicd->cpixo', onehot, w_oihw)      # (KH,W,Cin,W,Cout)
    return band.reshape(KH, W * Cin, W * Cout)


def _band_1x1(w_oi11, W):
    """(Cout,Cin,1,1) -> (W*Cin, W*Cout) block-diagonal matrix."""
    Cout, Cin = w_oi11.shape[:2]
    onehot = jnp.eye(W, dtype=w_oi11.dtype)
    band = jnp.einsum('px,oi->pixo', onehot, w_oi11[:, :, 0, 0])
    return band.reshape(W * Cin, W * Cout)


# ------------------------------ wrapper (glue) -------------------------------

def down_block_pallas(x_nchw, p, *, r):
    N, Cin, H, W = x_nchw.shape
    Cout = p["w1"].shape[0]
    if not r:
        assert Cin == Cout, "path_b=Identity requires in_channels == out_channels"

    # Lane-dense, row-haloed layout: (N, H+2, W*Cin).  Width padding is folded
    # into the banded weight matrices, so only 2 halo rows are materialized.
    x = jnp.transpose(x_nchw, (0, 2, 3, 1)).astype(jnp.float32)      # NHWC
    xp = jnp.pad(x.reshape(N, H, W * Cin), ((0, 0), (1, 1), (0, 0)))

    bf16 = lambda v: v.astype(jnp.bfloat16)
    row = lambda v: v.reshape(1, -1).astype(jnp.float32)

    args = [xp,
            bf16(_band_3x3(p["w1"], W)),       # (3, W*Cin,  W*Cout)
            bf16(_band_3x3(p["w2"], W)),       # (3, W*Cout, W*Cout)
            row(p["g1"]), row(p["be1"]), row(p["g2"]), row(p["be2"])]
    if r:
        args += [bf16(_band_1x1(p["wb"], W)),  # (W*Cin, W*Cout)
                 jnp.tile(p["bb"].astype(jnp.float32), W).reshape(1, W * Cout)]

    vmem = pl.BlockSpec(memory_space=pltpu.MemorySpace.VMEM)
    kernel = functools.partial(_down_block_kernel, N=N, H=H, W=W,
                               Cin=Cin, Cout=Cout, use_res_conv=r)

    out = pl.pallas_call(
        kernel,
        out_shape=jax.ShapeDtypeStruct((N * H, W * Cout), jnp.float32),
        in_specs=[vmem] * len(args),
        out_specs=vmem,
        scratch_shapes=[pltpu.VMEM((N, H + 2, W * Cout), jnp.bfloat16)],  # y1
        compiler_params=pltpu.CompilerParams(
            vmem_limit_bytes=32 * 1024 * 1024),
    )(*args)

    return jnp.transpose(out.reshape(N, H, W, Cout), (0, 3, 1, 2))   # -> NCHW


# --------------------------- reference & params ------------------------------

def _conv_bf16(x, w_oihw, b):
    # Mirrors the kernel's numerics: bf16 conv operands, f32 accumulation.
    y = jax.lax.conv_general_dilated(
        x.astype(jnp.bfloat16), w_oihw.astype(jnp.bfloat16),
        window_strides=(1, 1), padding="SAME",
        dimension_numbers=("NCHW", "OIHW", "NCHW"),
        preferred_element_type=jnp.float32)
    return y + b[None, :, None, None]


def _bn_train(y, gamma, beta):
    mean = jnp.mean(y, axis=(0, 2, 3), keepdims=True)
    var = jnp.mean((y - mean) ** 2, axis=(0, 2, 3), keepdims=True)
    return ((y - mean) * jax.lax.rsqrt(var + _EPS)
            * gamma[None, :, None, None] + beta[None, :, None, None])


def down_block_reference(x, p, *, r):
    # Biases b1/b2 kept here (faithful to the PyTorch module); they cancel
    # under training-mode BN, so the kernel may omit them.
    y = jnp.maximum(_bn_train(_conv_bf16(x, p["w1"], p["b1"]),
                              p["g1"], p["be1"]), 0.0)
    y = _bn_train(_conv_bf16(y, p["w2"], p["b2"]), p["g2"], p["be2"])
    res = _conv_bf16(x, p["wb"], p["bb"]) if r else x
    return y + res


def init_params(key, cin, cout, *, r):
    ks = jax.random.split(key, 3)

    def conv_init(k, shape):  # PyTorch-style uniform(-1/sqrt(fan_in), ...)
        fan_in = shape[1] * shape[2] * shape[3]
        bound = 1.0 / np.sqrt(fan_in)
        kw, kb = jax.random.split(k)
        w = jax.random.uniform(kw, shape, jnp.float32, -bound, bound)
        b = jax.random.uniform(kb, (shape[0],), jnp.float32, -bound, bound)
        return w, b

    w1, b1 = conv_init(ks[0], (cout, cin, 3, 3))
    w2, b2 = conv_init(ks[1], (cout, cout, 3, 3))
    if r:
        wb, bb = conv_init(ks[2], (cout, cin, 1, 1))
    else:
        wb = jnp.zeros((cout, cin, 1, 1), jnp.float32)
        bb = jnp.zeros((cout,), jnp.float32)
    ones = jnp.ones((cout,), jnp.float32)
    zeros = jnp.zeros((cout,), jnp.float32)
    return dict(w1=w1, b1=b1, g1=ones, be1=zeros,
                w2=w2, b2=b2, g2=ones, be2=zeros,
                wb=wb, bb=bb)


# ----------------------------------- main ------------------------------------

if __name__ == "__main__":
    key = jax.random.PRNGKey(0)
    kx1, kp1, kx2, kp2 = jax.random.split(key, 4)

    # Case 1: r=True, in_channels != out_channels (path_b = 1x1 conv).
    x1 = jax.random.normal(kx1, (2, 4, 16, 16), jnp.float32)
    p1 = init_params(kp1, 4, 8, r=True)
    out1 = jax.block_until_ready(down_block_pallas(x1, p1, r=True))
    ref1 = down_block_reference(x1, p1, r=True)
    np.testing.assert_allclose(np.asarray(out1), np.asarray(ref1),
                               atol=1e-2, rtol=1e-2)

    # Case 2: r=False (PyTorch default), path_b = Identity (needs cin == cout).
    x2 = jax.random.normal(kx2, (2, 4, 16, 16), jnp.float32)
    p2 = init_params(kp2, 4, 4, r=False)
    out2 = jax.block_until_ready(down_block_pallas(x2, p2, r=False))
    ref2 = down_block_reference(x2, p2, r=False)
    np.testing.assert_allclose(np.asarray(out2), np.asarray(ref2),
                               atol=1e-2, rtol=1e-2)

    print("KERNEL_OK")
</pallas_src>

<mosaic_0001>
module attributes {stable_mosaic.version = 11 : i64} {
  func.func @_down_block_kernel(%arg0: memref<2x18x64xf32, #tpu.memory_space<vmem>>, %arg1: memref<3x64x128xbf16, #tpu.memory_space<vmem>>, %arg2: memref<3x128x128xbf16, #tpu.memory_space<vmem>>, %arg3: memref<1x8xf32, #tpu.memory_space<vmem>>, %arg4: memref<1x8xf32, #tpu.memory_space<vmem>>, %arg5: memref<1x8xf32, #tpu.memory_space<vmem>>, %arg6: memref<1x8xf32, #tpu.memory_space<vmem>>, %arg7: memref<64x128xbf16, #tpu.memory_space<vmem>>, %arg8: memref<1x128xf32, #tpu.memory_space<vmem>>, %arg9: memref<32x128xf32, #tpu.memory_space<vmem>>, %arg10: memref<2x18x128xbf16, #tpu.memory_space<vmem>>) attributes {dimension_semantics = [], scalar_prefetch = 0 : i64, scratch_operands = 1 : i64, tpu.core_type = #tpu.core_type<tc>} {
    %c0 = arith.constant 0 : index
    %c0_0 = arith.constant 0 : index
    %c0_1 = arith.constant 0 : index
    %0 = vector.load %arg0[%c0, %c0_0, %c0_1] : memref<2x18x64xf32, #tpu.memory_space<vmem>>, vector<2x16x64xf32>
    %1 = vector.shape_cast %0 : vector<2x16x64xf32> to vector<32x64xf32>
    %2 = arith.truncf %1 : vector<32x64xf32> to vector<32x64xbf16>
    %c0_2 = arith.constant 0 : index
    %c0_3 = arith.constant 0 : index
    %c0_4 = arith.constant 0 : index
    %3 = vector.load %arg1[%c0_2, %c0_3, %c0_4] : memref<3x64x128xbf16, #tpu.memory_space<vmem>>, vector<1x64x128xbf16>
    %4 = vector.shape_cast %3 : vector<1x64x128xbf16> to vector<64x128xbf16>
    %cst = arith.constant dense<0.000000e+00> : vector<32x128xf32>
    %5 = tpu.matmul %2, %4, %cst {dimension_numbers = #tpu.dot_dimension_numbers<[1], [0], [0], [1], [0, 0, 1, 1], [], []>} : vector<32x64xbf16>, vector<64x128xbf16>, vector<32x128xf32> -> vector<32x128xf32>
    %c0_5 = arith.constant 0 : index
    %c1 = arith.constant 1 : index
    %c0_6 = arith.constant 0 : index
    %6 = vector.load %arg0[%c0_5, %c1, %c0_6] : memref<2x18x64xf32, #tpu.memory_space<vmem>>, vector<2x16x64xf32>
    %7 = vector.shape_cast %6 : vector<2x16x64xf32> to vector<32x64xf32>
    %8 = arith.truncf %7 : vector<32x64xf32> to vector<32x64xbf16>
    %c1_7 = arith.constant 1 : index
    %c0_8 = arith.constant 0 : index
    %c0_9 = arith.constant 0 : index
    %9 = vector.load %arg1[%c1_7, %c0_8, %c0_9] : memref<3x64x128xbf16, #tpu.memory_space<vmem>>, vector<1x64x128xbf16>
    %10 = vector.shape_cast %9 : vector<1x64x128xbf16> to vector<64x128xbf16>
    %cst_10 = arith.constant dense<0.000000e+00> : vector<32x128xf32>
    %11 = tpu.matmul %8, %10, %cst_10 {dimension_numbers = #tpu.dot_dimension_numbers<[1], [0], [0], [1], [0, 0, 1, 1], [], []>} : vector<32x64xbf16>, vector<64x128xbf16>, vector<32x128xf32> -> vector<32x128xf32>
    %12 = arith.addf %5, %11 : vector<32x128xf32>
    %c0_11 = arith.constant 0 : index
    %c2 = arith.constant 2 : index
    %c0_12 = arith.constant 0 : index
    %13 = vector.load %arg0[%c0_11, %c2, %c0_12] : memref<2x18x64xf32, #tpu.memory_space<vmem>>, vector<2x16x64xf32>
    %14 = vector.shape_cast %13 : vector<2x16x64xf32> to vector<32x64xf32>
    %15 = arith.truncf %14 : vector<32x64xf32> to vector<32x64xbf16>
    %c2_13 = arith.constant 2 : index
    %c0_14 = arith.constant 0 : index
    %c0_15 = arith.constant 0 : index
    %16 = vector.load %arg1[%c2_13, %c0_14, %c0_15] : memref<3x64x128xbf16, #tpu.memory_space<vmem>>, vector<1x64x128xbf16>
    %17 = vector.shape_cast %16 : vector<1x64x128xbf16> to vector<64x128xbf16>
    %cst_16 = arith.constant dense<0.000000e+00> : vector<32x128xf32>
    %18 = tpu.matmul %15, %17, %cst_16 {dimension_numbers = #tpu.dot_dimension_numbers<[1], [0], [0], [1], [0, 0, 1, 1], [], []>} : vector<32x64xbf16>, vector<64x128xbf16>, vector<32x128xf32> -> vector<32x128xf32>
    %19 = arith.addf %12, %18 : vector<32x128xf32>
    %cst_17 = arith.constant dense<0.000000e+00> : vector<128xf32>
    %20 = vector.multi_reduction <add>, %19, %cst_17 [0] : vector<32x128xf32> to vector<128xf32>
    %21 = vector.shape_cast %20 : vector<128xf32> to vector<1x128xf32>
    %22 = arith.mulf %19, %19 : vector<32x128xf32>
    %cst_18 = arith.constant dense<0.000000e+00> : vector<128xf32>
    %23 = vector.multi_reduction <add>, %22, %cst_18 [0] : vector<32x128xf32> to vector<128xf32>
    %24 = vector.shape_cast %23 : vector<128xf32> to vector<1x128xf32>
    %25 = tpu.concatenate %21, %24 in 0 : vector<1x128xf32>, vector<1x128xf32> -> vector<2x128xf32>
    %26 = vector.extract_strided_slice %25 {offsets = [0, 0], sizes = [2, 8], strides = [1, 1]} : vector<2x128xf32> to vector<2x8xf32>
    %27 = vector.extract_strided_slice %25 {offsets = [0, 8], sizes = [2, 8], strides = [1, 1]} : vector<2x128xf32> to vector<2x8xf32>
    %28 = arith.addf %26, %27 : vector<2x8xf32>
    %29 = vector.extract_strided_slice %25 {offsets = [0, 16], sizes = [2, 8], strides = [1, 1]} : vector<2x128xf32> to vector<2x8xf32>
    %30 = arith.addf %28, %29 : vector<2x8xf32>
    %31 = vector.extract_strided_slice %25 {offsets = [0, 24], sizes = [2, 8], strides = [1, 1]} : vector<2x128xf32> to vector<2x8xf32>
    %32 = arith.addf %30, %31 : vector<2x8xf32>
    %33 = vector.extract_strided_slice %25 {offsets = [0, 32], sizes = [2, 8], strides = [1, 1]} : vector<2x128xf32> to vector<2x8xf32>
    %34 = arith.addf %32, %33 : vector<2x8xf32>
    %35 = vector.extract_strided_slice %25 {offsets = [0, 40], sizes = [2, 8], strides = [1, 1]} : vector<2x128xf32> to vector<2x8xf32>
    %36 = arith.addf %34, %35 : vector<2x8xf32>
    %37 = vector.extract_strided_slice %25 {offsets = [0, 48], sizes = [2, 8], strides = [1, 1]} : vector<2x128xf32> to vector<2x8xf32>
    %38 = arith.addf %36, %37 : vector<2x8xf32>
    %39 = vector.extract_strided_slice %25 {offsets = [0, 56], sizes = [2, 8], strides = [1, 1]} : vector<2x128xf32> to vector<2x8xf32>
    %40 = arith.addf %38, %39 : vector<2x8xf32>
    %41 = vector.extract_strided_slice %25 {offsets = [0, 64], sizes = [2, 8], strides = [1, 1]} : vector<2x128xf32> to vector<2x8xf32>
    %42 = arith.addf %40, %41 : vector<2x8xf32>
    %43 = vector.extract_strided_slice %25 {offsets = [0, 72], sizes = [2, 8], strides = [1, 1]} : vector<2x128xf32> to vector<2x8xf32>
    %44 = arith.addf %42, %43 : vector<2x8xf32>
    %45 = vector.extract_strided_slice %25 {offsets = [0, 80], sizes = [2, 8], strides = [1, 1]} : vector<2x128xf32> to vector<2x8xf32>
    %46 = arith.addf %44, %45 : vector<2x8xf32>
    %47 = vector.extract_strided_slice %25 {offsets = [0, 88], sizes = [2, 8], strides = [1, 1]} : vector<2x128xf32> to vector<2x8xf32>
    %48 = arith.addf %46, %47 : vector<2x8xf32>
    %49 = vector.extract_strided_slice %25 {offsets = [0, 96], sizes = [2, 8], strides = [1, 1]} : vector<2x128xf32> to vector<2x8xf32>
    %50 = arith.addf %48, %49 : vector<2x8xf32>
    %51 = vector.extract_strided_slice %25 {offsets = [0, 104], sizes = [2, 8], strides = [1, 1]} : vector<2x128xf32> to vector<2x8xf32>
    %52 = arith.addf %50, %51 : vector<2x8xf32>
    %53 = vector.extract_strided_slice %25 {offsets = [0, 112], sizes = [2, 8], strides = [1, 1]} : vector<2x128xf32> to vector<2x8xf32>
    %54 = arith.addf %52, %53 : vector<2x8xf32>
    %55 = vector.extract_strided_slice %25 {offsets = [0, 120], sizes = [2, 8], strides = [1, 1]} : vector<2x128xf32> to vector<2x8xf32>
    %56 = arith.addf %54, %55 : vector<2x8xf32>
    %57 = vector.extract_strided_slice %56 {offsets = [0, 0], sizes = [1, 8], strides = [1, 1]} : vector<2x8xf32> to vector<1x8xf32>
    %cst_19 = arith.constant 0.001953125 : f32
    %58 = vector.broadcast %cst_19 : f32 to vector<1x8xf32>
    %59 = arith.mulf %57, %58 : vector<1x8xf32>
    %60 = vector.extract_strided_slice %56 {offsets = [1, 0], sizes = [1, 8], strides = [1, 1]} : vector<2x8xf32> to vector<1x8xf32>
    %cst_20 = arith.constant 0.001953125 : f32
    %61 = vector.broadcast %cst_20 : f32 to vector<1x8xf32>
    %62 = arith.mulf %60, %61 : vector<1x8xf32>
    %63 = arith.mulf %59, %59 : vector<1x8xf32>
    %64 = arith.subf %62, %63 : vector<1x8xf32>
    %c0_21 = arith.constant 0 : index
    %c0_22 = arith.constant 0 : index
    %65 = vector.load %arg3[%c0_21, %c0_22] : memref<1x8xf32, #tpu.memory_space<vmem>>, vector<1x8xf32>
    %cst_23 = arith.constant 9.99999974E-6 : f32
    %66 = vector.broadcast %cst_23 : f32 to vector<1x8xf32>
    %67 = arith.addf %64, %66 : vector<1x8xf32>
    %68 = math.rsqrt %67 : vector<1x8xf32>
    %69 = arith.mulf %65, %68 : vector<1x8xf32>
    %c0_24 = arith.constant 0 : index
    %c0_25 = arith.constant 0 : index
    %70 = vector.load %arg4[%c0_24, %c0_25] : memref<1x8xf32, #tpu.memory_space<vmem>>, vector<1x8xf32>
    %71 = arith.mulf %59, %69 : vector<1x8xf32>
    %72 = arith.subf %70, %71 : vector<1x8xf32>
    %73 = tpu.concatenate %69, %69, %69, %69, %69, %69, %69, %69, %69, %69, %69, %69, %69, %69, %69, %69 in 1 : vector<1x8xf32>, vector<1x8xf32>, vector<1x8xf32>, vector<1x8xf32>, vector<1x8xf32>, vector<1x8xf32>, vector<1x8xf32>, vector<1x8xf32>, vector<1x8xf32>, vector<1x8xf32>, vector<1x8xf32>, vector<1x8xf32>, vector<1x8xf32>, vector<1x8xf32>, vector<1x8xf32>, vector<1x8xf32> -> vector<1x128xf32>
    %74 = vector.broadcast %73 : vector<1x128xf32> to vector<32x128xf32>
    %75 = arith.mulf %19, %74 : vector<32x128xf32>
    %76 = tpu.concatenate %72, %72, %72, %72, %72, %72, %72, %72, %72, %72, %72, %72, %72, %72, %72, %72 in 1 : vector<1x8xf32>, vector<1x8xf32>, vector<1x8xf32>, vector<1x8xf32>, vector<1x8xf32>, vector<1x8xf32>, vector<1x8xf32>, vector<1x8xf32>, vector<1x8xf32>, vector<1x8xf32>, vector<1x8xf32>, vector<1x8xf32>, vector<1x8xf32>, vector<1x8xf32>, vector<1x8xf32>, vector<1x8xf32> -> vector<1x128xf32>
    %77 = vector.broadcast %76 : vector<1x128xf32> to vector<32x128xf32>
    %78 = arith.addf %75, %77 : vector<32x128xf32>
    %cst_26 = arith.constant 0.000000e+00 : f32
    %79 = vector.broadcast %cst_26 : f32 to vector<32x128xf32>
    %80 = arith.maximumf %78, %79 : vector<32x128xf32>
    %cst_27 = arith.constant 0.000000e+00 : bf16
    %81 = vector.broadcast %cst_27 : bf16 to vector<2x1x128xbf16>
    %c0_28 = arith.constant 0 : index
    %c0_29 = arith.constant 0 : index
    %c0_30 = arith.constant 0 : index
    %82 = vector.load %arg10[%c0_28, %c0_29, %c0_30] : memref<2x18x128xbf16, #tpu.memory_space<vmem>>, vector<2x1x128xbf16>
    tpu.vector_store %arg10[%c0_28, %c0_29, %c0_30], %81 {strides = array<i32>} : memref<2x18x128xbf16, #tpu.memory_space<vmem>>, vector<2x1x128xbf16>,
    %c0_31 = arith.constant 0 : index
    %c17 = arith.constant 17 : index
    %c0_32 = arith.constant 0 : index
    %83 = vector.load %arg10[%c0_31, %c17, %c0_32] : memref<2x18x128xbf16, #tpu.memory_space<vmem>>, vector<2x1x128xbf16>
    tpu.vector_store %arg10[%c0_31, %c17, %c0_32], %81 {strides = array<i32>} : memref<2x18x128xbf16, #tpu.memory_space<vmem>>, vector<2x1x128xbf16>,
    %84 = vector.shape_cast %80 : vector<32x128xf32> to vector<2x16x128xf32>
    %85 = arith.truncf %84 : vector<2x16x128xf32> to vector<2x16x128xbf16>
    %c0_33 = arith.constant 0 : index
    %c1_34 = arith.constant 1 : index
    %c0_35 = arith.constant 0 : index
    %86 = vector.load %arg10[%c0_33, %c1_34, %c0_35] : memref<2x18x128xbf16, #tpu.memory_space<vmem>>, vector<2x16x128xbf16>
    tpu.vector_store %arg10[%c0_33, %c1_34, %c0_35], %85 {strides = array<i32>} : memref<2x18x128xbf16, #tpu.memory_space<vmem>>, vector<2x16x128xbf16>,
    %c0_36 = arith.constant 0 : index
    %c0_37 = arith.constant 0 : index
    %c0_38 = arith.constant 0 : index
    %87 = vector.load %arg10[%c0_36, %c0_37, %c0_38] : memref<2x18x128xbf16, #tpu.memory_space<vmem>>, vector<2x16x128xbf16>
    %88 = vector.shape_cast %87 : vector<2x16x128xbf16> to vector<32x128xbf16>
    %c0_39 = arith.constant 0 : index
    %c0_40 = arith.constant 0 : index
    %c0_41 = arith.constant 0 : index
    %89 = vector.load %arg2[%c0_39, %c0_40, %c0_41] : memref<3x128x128xbf16, #tpu.memory_space<vmem>>, vector<1x128x128xbf16>
    %90 = vector.shape_cast %89 : vector<1x128x128xbf16> to vector<128x128xbf16>
    %cst_42 = arith.constant dense<0.000000e+00> : vector<32x128xf32>
    %91 = tpu.matmul %88, %90, %cst_42 {dimension_numbers = #tpu.dot_dimension_numbers<[1], [0], [0], [1], [0, 0, 1, 1], [], []>} : vector<32x128xbf16>, vector<128x128xbf16>, vector<32x128xf32> -> vector<32x128xf32>
    %c0_43 = arith.constant 0 : index
    %c1_44 = arith.constant 1 : index
    %c0_45 = arith.constant 0 : index
    %92 = vector.load %arg10[%c0_43, %c1_44, %c0_45] : memref<2x18x128xbf16, #tpu.memory_space<vmem>>, vector<2x16x128xbf16>
    %93 = vector.shape_cast %92 : vector<2x16x128xbf16> to vector<32x128xbf16>
    %c1_46 = arith.constant 1 : index
    %c0_47 = arith.constant 0 : index
    %c0_48 = arith.constant 0 : index
    %94 = vector.load %arg2[%c1_46, %c0_47, %c0_48] : memref<3x128x128xbf16, #tpu.memory_space<vmem>>, vector<1x128x128xbf16>
    %95 = vector.shape_cast %94 : vector<1x128x128xbf16> to vector<128x128xbf16>
    %cst_49 = arith.constant dense<0.000000e+00> : vector<32x128xf32>
    %96 = tpu.matmul %93, %95, %cst_49 {dimension_numbers = #tpu.dot_dimension_numbers<[1], [0], [0], [1], [0, 0, 1, 1], [], []>} : vector<32x128xbf16>, vector<128x128xbf16>, vector<32x128xf32> -> vector<32x128xf32>
    %97 = arith.addf %91, %96 : vector<32x128xf32>
    %c0_50 = arith.constant 0 : index
    %c2_51 = arith.constant 2 : index
    %c0_52 = arith.constant 0 : index
    %98 = vector.load %arg10[%c0_50, %c2_51, %c0_52] : memref<2x18x128xbf16, #tpu.memory_space<vmem>>, vector<2x16x128xbf16>
    %99 = vector.shape_cast %98 : vector<2x16x128xbf16> to vector<32x128xbf16>
    %c2_53 = arith.constant 2 : index
    %c0_54 = arith.constant 0 : index
    %c0_55 = arith.constant 0 : index
    %100 = vector.load %arg2[%c2_53, %c0_54, %c0_55] : memref<3x128x128xbf16, #tpu.memory_space<vmem>>, vector<1x128x128xbf16>
    %101 = vector.shape_cast %100 : vector<1x128x128xbf16> to vector<128x128xbf16>
    %cst_56 = arith.constant dense<0.000000e+00> : vector<32x128xf32>
    %102 = tpu.matmul %99, %101, %cst_56 {dimension_numbers = #tpu.dot_dimension_numbers<[1], [0], [0], [1], [0, 0, 1, 1], [], []>} : vector<32x128xbf16>, vector<128x128xbf16>, vector<32x128xf32> -> vector<32x128xf32>
    %103 = arith.addf %97, %102 : vector<32x128xf32>
    %cst_57 = arith.constant dense<0.000000e+00> : vector<128xf32>
    %104 = vector.multi_reduction <add>, %103, %cst_57 [0] : vector<32x128xf32> to vector<128xf32>
    %105 = vector.shape_cast %104 : vector<128xf32> to vector<1x128xf32>
    %106 = arith.mulf %103, %103 : vector<32x128xf32>
    %cst_58 = arith.constant dense<0.000000e+00> : vector<128xf32>
    %107 = vector.multi_reduction <add>, %106, %cst_58 [0] : vector<32x128xf32> to vector<128xf32>
    %108 = vector.shape_cast %107 : vector<128xf32> to vector<1x128xf32>
    %109 = tpu.concatenate %105, %108 in 0 : vector<1x128xf32>, vector<1x128xf32> -> vector<2x128xf32>
    %110 = vector.extract_strided_slice %109 {offsets = [0, 0], sizes = [2, 8], strides = [1, 1]} : vector<2x128xf32> to vector<2x8xf32>
    %111 = vector.extract_strided_slice %109 {offsets = [0, 8], sizes = [2, 8], strides = [1, 1]} : vector<2x128xf32> to vector<2x8xf32>
    %112 = arith.addf %110, %111 : vector<2x8xf32>
    %113 = vector.extract_strided_slice %109 {offsets = [0, 16], sizes = [2, 8], strides = [1, 1]} : vector<2x128xf32> to vector<2x8xf32>
    %114 = arith.addf %112, %113 : vector<2x8xf32>
    %115 = vector.extract_strided_slice %109 {offsets = [0, 24], sizes = [2, 8], strides = [1, 1]} : vector<2x128xf32> to vector<2x8xf32>
    %116 = arith.addf %114, %115 : vector<2x8xf32>
    %117 = vector.extract_strided_slice %109 {offsets = [0, 32], sizes = [2, 8], strides = [1, 1]} : vector<2x128xf32> to vector<2x8xf32>
    %118 = arith.addf %116, %117 : vector<2x8xf32>
    %119 = vector.extract_strided_slice %109 {offsets = [0, 40], sizes = [2, 8], strides = [1, 1]} : vector<2x128xf32> to vector<2x8xf32>
    %120 = arith.addf %118, %119 : vector<2x8xf32>
    %121 = vector.extract_strided_slice %109 {offsets = [0, 48], sizes = [2, 8], strides = [1, 1]} : vector<2x128xf32> to vector<2x8xf32>
    %122 = arith.addf %120, %121 : vector<2x8xf32>
    %123 = vector.extract_strided_slice %109 {offsets = [0, 56], sizes = [2, 8], strides = [1, 1]} : vector<2x128xf32> to vector<2x8xf32>
    %124 = arith.addf %122, %123 : vector<2x8xf32>
    %125 = vector.extract_strided_slice %109 {offsets = [0, 64], sizes = [2, 8], strides = [1, 1]} : vector<2x128xf32> to vector<2x8xf32>
    %126 = arith.addf %124, %125 : vector<2x8xf32>
    %127 = vector.extract_strided_slice %109 {offsets = [0, 72], sizes = [2, 8], strides = [1, 1]} : vector<2x128xf32> to vector<2x8xf32>
    %128 = arith.addf %126, %127 : vector<2x8xf32>
    %129 = vector.extract_strided_slice %109 {offsets = [0, 80], sizes = [2, 8], strides = [1, 1]} : vector<2x128xf32> to vector<2x8xf32>
    %130 = arith.addf %128, %129 : vector<2x8xf32>
    %131 = vector.extract_strided_slice %109 {offsets = [0, 88], sizes = [2, 8], strides = [1, 1]} : vector<2x128xf32> to vector<2x8xf32>
    %132 = arith.addf %130, %131 : vector<2x8xf32>
    %133 = vector.extract_strided_slice %109 {offsets = [0, 96], sizes = [2, 8], strides = [1, 1]} : vector<2x128xf32> to vector<2x8xf32>
    %134 = arith.addf %132, %133 : vector<2x8xf32>
    %135 = vector.extract_strided_slice %109 {offsets = [0, 104], sizes = [2, 8], strides = [1, 1]} : vector<2x128xf32> to vector<2x8xf32>
    %136 = arith.addf %134, %135 : vector<2x8xf32>
    %137 = vector.extract_strided_slice %109 {offsets = [0, 112], sizes = [2, 8], strides = [1, 1]} : vector<2x128xf32> to vector<2x8xf32>
    %138 = arith.addf %136, %137 : vector<2x8xf32>
    %139 = vector.extract_strided_slice %109 {offsets = [0, 120], sizes = [2, 8], strides = [1, 1]} : vector<2x128xf32> to vector<2x8xf32>
    %140 = arith.addf %138, %139 : vector<2x8xf32>
    %141 = vector.extract_strided_slice %140 {offsets = [0, 0], sizes = [1, 8], strides = [1, 1]} : vector<2x8xf32> to vector<1x8xf32>
    %cst_59 = arith.constant 0.001953125 : f32
    %142 = vector.broadcast %cst_59 : f32 to vector<1x8xf32>
    %143 = arith.mulf %141, %142 : vector<1x8xf32>
    %144 = vector.extract_strided_slice %140 {offsets = [1, 0], sizes = [1, 8], strides = [1, 1]} : vector<2x8xf32> to vector<1x8xf32>
    %cst_60 = arith.constant 0.001953125 : f32
    %145 = vector.broadcast %cst_60 : f32 to vector<1x8xf32>
    %146 = arith.mulf %144, %145 : vector<1x8xf32>
    %147 = arith.mulf %143, %143 : vector<1x8xf32>
    %148 = arith.subf %146, %147 : vector<1x8xf32>
    %c0_61 = arith.constant 0 : index
    %c0_62 = arith.constant 0 : index
    %149 = vector.load %arg5[%c0_61, %c0_62] : memref<1x8xf32, #tpu.memory_space<vmem>>, vector<1x8xf32>
    %cst_63 = arith.constant 9.99999974E-6 : f32
    %150 = vector.broadcast %cst_63 : f32 to vector<1x8xf32>
    %151 = arith.addf %148, %150 : vector<1x8xf32>
    %152 = math.rsqrt %151 : vector<1x8xf32>
    %153 = arith.mulf %149, %152 : vector<1x8xf32>
    %c0_64 = arith.constant 0 : index
    %c0_65 = arith.constant 0 : index
    %154 = vector.load %arg6[%c0_64, %c0_65] : memref<1x8xf32, #tpu.memory_space<vmem>>, vector<1x8xf32>
    %155 = arith.mulf %143, %153 : vector<1x8xf32>
    %156 = arith.subf %154, %155 : vector<1x8xf32>
    %157 = tpu.concatenate %153, %153, %153, %153, %153, %153, %153, %153, %153, %153, %153, %153, %153, %153, %153, %153 in 1 : vector<1x8xf32>, vector<1x8xf32>, vector<1x8xf32>, vector<1x8xf32>, vector<1x8xf32>, vector<1x8xf32>, vector<1x8xf32>, vector<1x8xf32>, vector<1x8xf32>, vector<1x8xf32>, vector<1x8xf32>, vector<1x8xf32>, vector<1x8xf32>, vector<1x8xf32>, vector<1x8xf32>, vector<1x8xf32> -> vector<1x128xf32>
    %158 = vector.broadcast %157 : vector<1x128xf32> to vector<32x128xf32>
    %159 = arith.mulf %103, %158 : vector<32x128xf32>
    %160 = tpu.concatenate %156, %156, %156, %156, %156, %156, %156, %156, %156, %156, %156, %156, %156, %156, %156, %156 in 1 : vector<1x8xf32>, vector<1x8xf32>, vector<1x8xf32>, vector<1x8xf32>, vector<1x8xf32>, vector<1x8xf32>, vector<1x8xf32>, vector<1x8xf32>, vector<1x8xf32>, vector<1x8xf32>, vector<1x8xf32>, vector<1x8xf32>, vector<1x8xf32>, vector<1x8xf32>, vector<1x8xf32>, vector<1x8xf32> -> vector<1x128xf32>
    %161 = vector.broadcast %160 : vector<1x128xf32> to vector<32x128xf32>
    %162 = arith.addf %159, %161 : vector<32x128xf32>
    %c0_66 = arith.constant 0 : index
    %c1_67 = arith.constant 1 : index
    %c0_68 = arith.constant 0 : index
    %163 = vector.load %arg0[%c0_66, %c1_67, %c0_68] : memref<2x18x64xf32, #tpu.memory_space<vmem>>, vector<2x16x64xf32>
    %164 = vector.shape_cast %163 : vector<2x16x64xf32> to vector<32x64xf32>
    %165 = arith.truncf %164 : vector<32x64xf32> to vector<32x64xbf16>
    %c0_69 = arith.constant 0 : index
    %c0_70 = arith.constant 0 : index
    %166 = vector.load %arg7[%c0_69, %c0_70] : memref<64x128xbf16, #tpu.memory_space<vmem>>, vector<64x128xbf16>
    %cst_71 = arith.constant dense<0.000000e+00> : vector<32x128xf32>
    %167 = tpu.matmul %165, %166, %cst_71 {dimension_numbers = #tpu.dot_dimension_numbers<[1], [0], [0], [1], [0, 0, 1, 1], [], []>} : vector<32x64xbf16>, vector<64x128xbf16>, vector<32x128xf32> -> vector<32x128xf32>
    %c0_72 = arith.constant 0 : index
    %c0_73 = arith.constant 0 : index
    %168 = vector.load %arg8[%c0_72, %c0_73] : memref<1x128xf32, #tpu.memory_space<vmem>>, vector<1x128xf32>
    %169 = vector.broadcast %168 : vector<1x128xf32> to vector<32x128xf32>
    %170 = arith.addf %167, %169 : vector<32x128xf32>
    %171 = arith.addf %162, %170 : vector<32x128xf32>
    %c0_74 = arith.constant 0 : index
    %c0_75 = arith.constant 0 : index
    %172 = vector.load %arg9[%c0_74, %c0_75] : memref<32x128xf32, #tpu.memory_space<vmem>>, vector<32x128xf32>
    tpu.vector_store %arg9[%c0_74, %c0_75], %171 {strides = array<i32>} : memref<32x128xf32, #tpu.memory_space<vmem>>, vector<32x128xf32>,
    return
  }
}

</mosaic_0001>

<bundles_post_ra>
// kernel: tpu_custom_call.1
= control target key start
LH: loop header
LB: loop body
LE: loop exit
PB: predicated region body
PF: predicated region fallthrough
CT: control target
= control target key end

     0   :  { %14 = vsyncpa [#allocation4], 0  ;;  %s2070_s0 = inlined_call_operand.vmem [shape: f32[2,18,64], index: 0, kind: input, shape index: {}]   ;;  %s2071_s1 = inlined_call_operand.hbm [shape: bf16[3,64,128], index: 1, kind: input, shape index: {}]   ;;  %s2072_s2 = inlined_call_operand.hbm [shape: bf16[3,128,128], index: 2, kind: input, shape index: {}]   ;;  %s2073_s3 = inlined_call_operand.vmem [shape: f32[1,8], index: 3, kind: input, shape index: {}]   ;;  %s2074_s4 = inlined_call_operand.vmem [shape: f32[1,8], index: 4, kind: input, shape index: {}]   ;;  %s2075_s5 = inlined_call_operand.vmem [shape: f32[1,8], index: 5, kind: input, shape index: {}]   ;;  %s2076_s6 = inlined_call_operand.vmem [shape: f32[1,8], index: 6, kind: input, shape index: {}]   ;;  %s2077_s7 = inlined_call_operand.vmem [shape: bf16[64,128], index: 7, kind: input, shape index: {}]   ;;  %s2078_s8 = inlined_call_operand.vmem [shape: f32[1,128], index: 8, kind: input, shape index: {}]   ;;  %s2079_s9 = inlined_call_operand.hbm [shape: f32[32,128], index: 9, kind: output, shape index: {}]  }
   0x1   :  { %15 = vsyncpa [#allocation7], 0 }
   0x2   :  { %16 = vsyncpa [#allocation5], 0  ;;  %s23_s11 = sshll.u32 %s2071_s1, 4  ;;  %s1631_s12 = smov [#allocation3]   ;;  %s24_s11 = int_to_ptr.hbm [resolvable:$true] %s23_s11 }
   0x3   :  { %s25_s13 = sshll.u32 %s1631_s12, 4  ;;  %s36_s16 = sshll.u32 %s2072_s2, 4  ;;  %s26_s13 = int_to_ptr.vmem [resolvable:$true] %s25_s13  ;;  %s37_s16 = int_to_ptr.hbm [resolvable:$true] %s36_s16 }
   0x4   :  { %s1632_s17 = smov 64   ;;  %s1633_s18 = smov 4  }
   0x5   :  { %31 = dma.hbm_to_vmem [thread:$0]  %s24_s11, 1536, %s26_s13, [#allocation4], %s1632_s17, %s1632_s17, %s1633_s18  }
   0x6   :  { %s1634_s19 = smov [#allocation6]  }
   0x7   :  { %s38_s20 = sshll.u32 %s1634_s19, 4  ;;  %s39_s20 = int_to_ptr.vmem [resolvable:$true] %s38_s20 }
   0x8   :  { %44 = dma.hbm_to_vmem [thread:$0]  %s37_s16, 3072, %s39_s20, [#allocation7], %s1632_s17, %s1632_s17, %s1633_s18  }
   0x9   :  { %1625 = dma.done.wait [#allocation4], 1536  }
   0xa   :  { %1626 = vsyncadd [#allocation4], 4294965760 }
   0xb   :  { %1627 = dma.done.wait [#allocation7], 3072  }
   0xc   :  { %1628 = vsyncadd [#allocation7], 4294964224  ;;  %v1493_v0 = vld [vmem:[#allocation3 + $0x38] sm:$0xff]  ;;  %v1492_v3 = vld [vmem:[#allocation3 + $0x30] sm:$0xff]  ;;  %vm119_vm0 = vcmask 523264   ;;  %vm284_vm1 = vcmask 1040384  }
   0xd   :  { %v1489_v1 = vld [vmem:[#allocation3 + $0x18] sm:$0xff]  ;;  %130 = vmatpush.bf16.msra.mxu0 %v1493_v0  ;;  %v1488_v4 = vld [vmem:[#allocation3 + $0x10] sm:$0xff]  ;;  %v1491_v6 = vld [vmem:[#allocation3 + $0x28] sm:$0xff]  ;;  %vm527_vm2 = vsmask.f32 256  ;;  %s1635_s21 = smov 88  }
   0xe   :  { %v1497_v2 = vld [vmem:[#allocation3 + $0x58] sm:$0xff]  ;;  %179 = vmatpush.bf16.msra.mxu1 %v1489_v1  ;;  %v1496_v5 = vld [vmem:[#allocation3 + $0x50] sm:$0xff]  ;;  %v1487_v7 = vld [vmem:[#allocation3 + $0x8] sm:$0xff]  ;;  %vm535_vm4 = vsmask.f32 7938  ;;  %s1636_s22 = smov 104  }
   0xf   :  { %243 = vmatpush.bf16.msra.mxu2 %v1497_v2  ;;  %v1495_v8 = vld [vmem:[#allocation3 + $0x48] sm:$0xff]  ;;  %v1490_v9 = vld [vmem:[#allocation3 + $0x20] sm:$0xff]  ;;  %v68_v23 = vld [vmem:[%s2070_s0 + $0x18] sm:$0xff]  ;;  %s1637_s23 = smov 120   ;;  %s1638_s24 = smov 80   ;;  %vm421_vm9 = vcmask 64512  }
  0x10   :  { %v1486_v10 = vld [vmem:[#allocation3] sm:$0xff]  ;;  %v81_v12 = vld [vmem:[%s2070_s0 + $0x9] sm:$0xff]  ;;  %v529_v38 = vld [vmem:[#allocation2] sm:$0x1]  ;;  %s1639_s25 = smov 96   ;;  %s1640_s26 = smov 112  }
  0x11   :  { %131 = vmatpush.bf16.msra.mxu0 %v1492_v3  ;;  %v80_v11 = vld [vmem:[%s2070_s0 + $0x1] sm:$0xff]  ;;  %v195_v17 = vld [vmem:[%s2070_s0 + $0xa] sm:$0xff]  ;;  %v82_v21 = vld [vmem:[%s2070_s0 + $0x19] sm:$0xff]  ;;  %s1641_s27 = smov 56   ;;  %s1642_s28 = smov 72   ;;  %vm423_vm10 = vcmask 130048  }
  0x12   :  { %180 = vmatpush.bf16.msra.mxu1 %v1488_v4  ;;  %v66_v13 = vld [vmem:[%s2070_s0] sm:$0xff]  ;;  %v67_v14 = vld [vmem:[%s2070_s0 + $0x8] sm:$0xff]  ;;  %v84_v18 = vpack.c.bf16 %v81_v12, %v80_v11  ;;  %v532_v39 = vld [vmem:[#allocation2 + $0xc] sm:$0x1]  ;;  %s1643_s29 = smov 32   ;;  %s1644_s30 = smov 40  }
  0x13   :  { %244 = vmatpush.bf16.msra.mxu2 %v1496_v5  ;;  %v1494_v15 = vld [vmem:[#allocation3 + $0x40] sm:$0xff]  ;;  %v70_v19 = vpack.c.bf16 %v67_v14, %v66_v13  ;;  %vm1755_vm3 = vmand %vm284_vm1, %vm527_vm2  ;;  %v537_v41 = vld [vmem:[#allocation2 + $0x8] sm:$0x1]  ;;  %s1645_s10 = smov 48   ;;  %s1646_s11 = smov 8   ;;  %vm425_vm11 = vcmask 195584  }
  0x14   :  { %v194_v16 = vld [vmem:[%s2070_s0 + $0x2] sm:$0xff]  ;;  %v196_v25 = vld [vmem:[%s2070_s0 + $0x1a] sm:$0xff]  ;;  %v530_v43 = vsel %vm1755_vm3, 0, %v529_v38  ;;  %v533_v44 = vsel %vm1755_vm3, 0, %v532_v39  ;;  %vm536_vm5 = vmand %vm284_vm1, %vm535_vm4  ;;  %s1647_s12 = smov 16   ;;  %s1648_s13 = smov 24  }
  0x15   :  { %132 = vmatpush.bf16.msra.mxu0 %v1491_v6  ;;  %v198_v20 = vpack.c.bf16 %v195_v17, %v194_v16  ;;  %v83_v22 = vld [vmem:[%s2070_s0 + $0x21] sm:$0xff]  ;;  %v540_v42 = vld [vmem:[#allocation2 + $0x14] sm:$0x1]  ;;  %531 = vst [vmem:[#allocation2] sm:$0x1] %v530_v43  ;;  %v538_v45 = vsel %vm536_vm5, 0, %v537_v41 }
  0x16   :  { %181 = vmatpush.bf16.msra.mxu1 %v1487_v7  ;;  %v69_v24 = vld [vmem:[%s2070_s0 + $0x20] sm:$0xff]  ;;  %v85_v27 = vpack.c.bf16 %v83_v22, %v82_v21  ;;  %v541_v46 = vsel %vm536_vm5, 0, %v540_v42  ;;  %534 = vst [vmem:[#allocation2 + $0xc] sm:$0x1] %v533_v44  ;;  %vm2080_vm12 = vcmask 261120   ;;  %vm2081_vm13 = vcmask 326656  }
  0x17   :  { %245 = vmatpush.bf16.msra.mxu2 %v1495_v8  ;;  %v197_v26 = vld [vmem:[%s2070_s0 + $0x22] sm:$0xff]  ;;  %v71_v28 = vpack.c.bf16 %v69_v24, %v68_v23  ;;  %539 = vst [vmem:[#allocation2 + $0x8] sm:$0x1] %v538_v45  ;;  %vm431_vm14 = vcmask 392192   ;;  %vm2082_vm15 = vcmask 457728   ;;  %vm436_vm5 = vcmask 588800  }
  0x18   :  { %v199_v29 = vpack.c.bf16 %v197_v26, %v196_v25  ;;  %542 = vst [vmem:[#allocation2 + $0x14] sm:$0x1] %v541_v46 }
  0x19   :  { %133 = vmatpush.bf16.msra.mxu0 %v1490_v9 }
  0x1a   :  { %182 = vmatpush.bf16.msra.mxu1 %v1486_v10 }
  0x1b   :  { %246 = vmatpush.bf16.msra.mxu2 %v1494_v15 }
  0x1c   :  { %1324 = vmatmul.msk.bf16.vlgmr.msra.gmra.mxu0 %vm119_vm0, %v84_v18 }
  0x1d   :  { %1342 = vmatmul.msk.bf16.vlgmr.msra.gmra.mxu1 %vm119_vm0, %v70_v19 }
  0x1e   :  { %1360 = vmatmul.msk.bf16.vlgmr.msra.gmra.mxu2 %vm119_vm0, %v198_v20 }
  0x2c   :  { %1325 = vmatmul.msk.bf16.gmra.mxu0 %vm119_vm0, %v85_v27 }
  0x2d   :  { %1343 = vmatmul.msk.bf16.gmra.mxu1 %vm119_vm0, %v71_v28 }
  0x2e   :  { %1361 = vmatmul.msk.bf16.gmra.mxu2 %vm119_vm0, %v199_v29 }
  0x99   :  { %v135_v30 = vpop.f32.mrf.mxu0 }
  0x9a   :  { %v184_v31 = vpop.f32.mrf.mxu1 }
  0x9b   :  { %v185_v47 = vadd.f32 %v184_v31, %v135_v30 }
  0xa1   :  { %v248_v32 = vpop.f32.mrf.mxu2  ;;  %v137_v33 = vpop.f32.mrf.mxu0 }
  0xa2   :  { %v186_v34 = vpop.f32.mrf.mxu1  ;;  %v1767_v52 = vadd.f32 %v248_v32, %v185_v47 }
  0xa3   :  { %v187_v48 = vadd.f32 %v186_v34, %v137_v33 }
  0xa4   :  { %v271_v57 = vmul.f32 %v1767_v52, %v1767_v52 }
  0xa9   :  { %v250_v35 = vpop.f32.mrf.mxu2  ;;  %v140_v36 = vpop.f32.mrf.mxu0 }
  0xaa   :  { %v189_v37 = vpop.f32.mrf.mxu1  ;;  %v1765_v51 = vadd.f32 %v250_v35, %v187_v48 }
  0xab   :  { %v190_v49 = vadd.f32 %v189_v37, %v140_v36 }
  0xac   :  { %v272_v56 = vmul.f32 %v1765_v51, %v1765_v51  ;;  %v262_v58 = vadd.f32 %v1765_v51, %v1767_v52 }
  0xae   :  { %v275_v62 = vadd.f32 %v272_v56, %v271_v57 }
  0xb1   :  { %v253_v50 = vpop.f32.mrf.mxu2  ;;  %v142_v54 = vpop.f32.mrf.mxu0 }
  0xb2   :  { %v1769_v53 = vadd.f32 %v253_v50, %v190_v49  ;;  %v191_v55 = vpop.f32.mrf.mxu1 }
  0xb3   :  { %v192_v60 = vadd.f32 %v191_v55, %v142_v54 }
  0xb4   :  { %v273_v59 = vmul.f32 %v1769_v53, %v1769_v53  ;;  %v263_v63 = vadd.f32 %v262_v58, %v1769_v53 }
  0xb6   :  { %v276_v1 = vadd.f32 %v275_v62, %v273_v59 }
  0xb9   :  { %v255_v61 = vpop.f32.mrf.mxu2 }
  0xba   :  { %v1780_v0 = vadd.f32 %v255_v61, %v192_v60 }
  0xbc   :  { %v264_v2 = vadd.f32 %v263_v63, %v1780_v0  ;;  %v274_v3 = vmul.f32 %v1780_v0, %v1780_v0 }
  0xbe   :  { %v265_v4 = vrot.slane %v264_v2, 4  ;;  %v277_v5 = vadd.f32 %v276_v1, %v274_v3  ;;  %v353_v1 = vld [vmem:[%s2073_s3] sm:$0x1] }
  0xc0   :  { %v266_v6 = vadd.f32 %v265_v4, %v264_v2  ;;  %v278_v7 = vrot.slane %v277_v5, 4 }
  0xc2   :  { %v267_v8 = vrot.slane %v266_v6, 2  ;;  %v279_v9 = vadd.f32 %v278_v7, %v277_v5 }
  0xc4   :  { %v268_v10 = vadd.f32 %v267_v8, %v266_v6  ;;  %v280_v11 = vrot.slane %v279_v9, 2  ;;  %v371_v6 = vld [vmem:[%s2074_s4] sm:$0x1] }
  0xc6   :  { %v269_v12 = vrot.slane %v268_v10, 1  ;;  %v281_v13 = vadd.f32 %v280_v11, %v279_v9 }
  0xc8   :  { %v282_v14 = vrot.slane %v281_v13, 1  ;;  %v270_v15 = vadd.f32 %v269_v12, %v268_v10 }
  0xca   :  { %v283_v16 = vadd.f32 %v282_v14, %v281_v13 }
  0xcc   :  { %v285_v17 = vsel %vm284_vm1, %v270_v15, %v283_v16 }
  0xcd   :  { %303 = vrot.lane.b32.xlu2 %v285_v17, %s1635_s21  ;;  %295 = vrot.lane.b32.xlu1 %v285_v17, %s1636_s22 }
  0xce   :  { %287 = vrot.lane.b32.xlu0 %v285_v17, %s1637_s23 }
  0xd5   :  { %307 = vrot.lane.b32.xlu2 %v285_v17, %s1638_s24  ;;  %299 = vrot.lane.b32.xlu1 %v285_v17, %s1639_s25 }
  0xd6   :  { %291 = vrot.lane.b32.xlu0 %v285_v17, %s1640_s26 }
  0xdd   :  { %319 = vrot.lane.b32.xlu2 %v285_v17, %s1641_s27  ;;  %315 = vrot.lane.b32.xlu1 %v285_v17, %s1632_s17 }
  0xde   :  { %311 = vrot.lane.b32.xlu0 %v285_v17, %s1642_s28 }
  0xe5   :  { %331 = vrot.lane.b32.xlu2 %v285_v17, %s1643_s29  ;;  %327 = vrot.lane.b32.xlu1 %v285_v17, %s1644_s30 }
  0xe6   :  { %323 = vrot.lane.b32.xlu0 %v285_v17, %s1645_s10 }
  0xed   :  { %343 = vrot.lane.b32.xlu2 %v285_v17, %s1646_s11  ;;  %339 = vrot.lane.b32.xlu1 %v285_v17, %s1647_s12 }
  0xee   :  { %335 = vrot.lane.b32.xlu0 %v285_v17, %s1648_s13 }
 0x127   :  { %v304_v18 = vpop.permute.xlu2 %303 }
 0x12f   :  { %v308_v21 = vpop.permute.xlu2 %307 }
 0x137   :  { %v320_v30 = vpop.permute.xlu2 %319 }
 0x13f   :  { %v296_v19 = vpop.permute.xlu1 %295  ;;  %v332_v39 = vpop.permute.xlu2 %331 }
 0x140   :  { %v288_v20 = vpop.permute.xlu0 %287 }
 0x141   :  { %v290_v22 = vadd.f32 %v288_v20, %v285_v17 }
 0x147   :  { %v300_v23 = vpop.permute.xlu1 %299  ;;  %v344_v47 = vpop.permute.xlu2 %343 }
 0x148   :  { %v292_v24 = vpop.permute.xlu0 %291 }
 0x149   :  { %v294_v25 = vadd.f32 %v292_v24, %v290_v22 }
 0x14b   :  { %v298_v26 = vadd.f32 %v296_v19, %v294_v25 }
 0x14d   :  { %v302_v27 = vadd.f32 %v300_v23, %v298_v26  ;;  %v1507_v26 = vld [vmem:[#allocation6 + $0x38] sm:$0xff] }
 0x14e   :  { %830 = vmatpush.bf16.msrb.mxu0 %v1507_v26 }
 0x14f   :  { %v316_v28 = vpop.permute.xlu1 %315  ;;  %v306_v29 = vadd.f32 %v304_v18, %v302_v27 }
 0x150   :  { %v312_v31 = vpop.permute.xlu0 %311 }
 0x151   :  { %v310_v32 = vadd.f32 %v308_v21, %v306_v29 }
 0x153   :  { %v314_v33 = vadd.f32 %v312_v31, %v310_v32 }
 0x155   :  { %v318_v34 = vadd.f32 %v316_v28, %v314_v33 }
 0x157   :  { %v322_v35 = vadd.f32 %v320_v30, %v318_v34  ;;  %v328_v36 = vpop.permute.xlu1 %327  ;;  %v1506_v34 = vld [vmem:[#allocation6 + $0x30] sm:$0xff] }
 0x158   :  { %v324_v37 = vpop.permute.xlu0 %323  ;;  %831 = vmatpush.bf16.msrb.mxu0 %v1506_v34  ;;  %v1516_v34 = vld [vmem:[#allocation6 + $0x80] sm:$0xff] }
 0x159   :  { %v326_v38 = vadd.f32 %v324_v37, %v322_v35 }
 0x15b   :  { %v330_v41 = vadd.f32 %v328_v36, %v326_v38 }
 0x15d   :  { %v334_v42 = vadd.f32 %v332_v39, %v330_v41 }
 0x15f   :  { %v340_v45 = vpop.permute.xlu1 %339 }
 0x160   :  { %v336_v43 = vpop.permute.xlu0 %335 }
 0x161   :  { %v338_v44 = vadd.f32 %v336_v43, %v334_v42  ;;  %v1523_v42 = vld [vmem:[#allocation6 + $0xb8] sm:$0xff]  ;;  %v1505_v43 = vld [vmem:[#allocation6 + $0x28] sm:$0xff] }
 0x162   :  { %945 = vmatpush.bf16.msrb.mxu1 %v1523_v42  ;;  %832 = vmatpush.bf16.msrb.mxu0 %v1505_v43 }
 0x163   :  { %v342_v46 = vadd.f32 %v340_v45, %v338_v44 }
 0x165   :  { %v346_v48 = vadd.f32 %v344_v47, %v342_v46  ;;  %v1515_v47 = vld [vmem:[#allocation6 + $0x78] sm:$0xff] }
 0x166   :  { %751 = vmatpush.bf16.msra.mxu3 %v1515_v47 }
 0x167   :  { %v347_v49 = vmul.f32 0.001953125, %v346_v48  ;;  %v1522_v48 = vld [vmem:[#allocation6 + $0xb0] sm:$0xff] }
 0x168   :  { %946 = vmatpush.bf16.msrb.mxu1 %v1522_v48 }
 0x169   :  { %v348_v50 = vmul.f32 %v347_v49, %v347_v49 }
 0x16b   :  { %v350_v54 = vrot.slane %v348_v50, 7 }
 0x16d   :  { %v352_v55 = vsub.f32 %v347_v49, %v350_v54 }
 0x16f   :  { %v354_v56 = vadd.f32 1e-05, %v352_v55 }
 0x171   :  { %1549 = vrsqrt.f32 %v354_v56  ;;  %vm361_vm7 = vweird.f32 %v354_v56 }
 0x177   :  { %v1550_v57 = vpop.eup %1549 }
 0x178   :  { %v356_v58 = vmul.f32 %v1550_v57, %v354_v56  ;;  %vm362_vm6 = vweird.f32 %v1550_v57 }
 0x179   :  { %vm363_vm8 = vmor %vm361_vm7, %vm362_vm6  ;;  %vm438_vm6 = vcmask 654336   ;;  %vm440_vm7 = vcmask 719872  }
 0x17a   :  { %v357_v59 = vmul.f32 %v1550_v57, %v356_v58 }
 0x17c   :  { %v358_v60 = vmul.f32 0.5, %v357_v59  ;;  %v1514_v59 = vld [vmem:[#allocation6 + $0x70] sm:$0xff] }
 0x17d   :  { %752 = vmatpush.bf16.msra.mxu3 %v1514_v59 }
 0x17e   :  { %v359_v61 = vsub.f32 1.5, %v358_v60  ;;  %v1521_v60 = vld [vmem:[#allocation6 + $0xa8] sm:$0xff] }
 0x17f   :  { %947 = vmatpush.bf16.msrb.mxu1 %v1521_v60 }
 0x180   :  { %v360_v62 = vmul.f32 %v1550_v57, %v359_v61  ;;  %v1503_v61 = vld [vmem:[#allocation6 + $0x18] sm:$0xff] }
 0x182   :  { %v364_v63 = vsel %vm363_vm8, %v1550_v57, %v360_v62  ;;  %vm2086_vm8 = vcmask 785408  }
 0x183   :  { %366 = vst [vmem:[#allocation1] sm:$0xff] %v364_v63 }
 0x18a   :  { %v368_v2 = vld [vmem:[#allocation1 + $0x1] ss:$9 sm:$0xff] }
 0x18b   :  { %v370_v3 = vmul.f32 %v368_v2, %v353_v1  ;;  %v1513_v2 = vld [vmem:[#allocation6 + $0x68] sm:$0xff] }
 0x18c   :  { %753 = vmatpush.bf16.msra.mxu3 %v1513_v2 }
 0x18d   :  { %v375_v4 = vperm.slane %v370_v3, 0  ;;  %v372_v5 = vmul.f32 %v370_v3, %v347_v49  ;;  %v1504_v49 = vld [vmem:[#allocation6 + $0x20] sm:$0xff] }
 0x18e   :  { %833 = vmatpush.bf16.msrb.mxu0 %v1504_v49 }
 0x18f   :  { %382 = vrot.lane.b32.xlu2 %v375_v4, %s1648_s13  ;;  %379 = vrot.lane.b32.xlu1 %v375_v4, %s1647_s12  ;;  %v373_v7 = vsub.f32 %v371_v6, %v372_v5 }
 0x190   :  { %376 = vrot.lane.b32.xlu0 %v375_v4, %s1646_s11 }
 0x191   :  { %v456_v8 = vperm.slane %v373_v7, 0 }
 0x192   :  { %834 = vmatpush.bf16.msrb.mxu0 %v1503_v61 }
 0x197   :  { %391 = vrot.lane.b32.xlu2 %v375_v4, %s1645_s10  ;;  %385 = vrot.lane.b32.xlu1 %v375_v4, %s1643_s29 }
 0x198   :  { %388 = vrot.lane.b32.xlu0 %v375_v4, %s1644_s30 }
 0x19f   :  { %400 = vrot.lane.b32.xlu2 %v375_v4, %s1642_s28  ;;  %394 = vrot.lane.b32.xlu1 %v375_v4, %s1641_s27 }
 0x1a0   :  { %397 = vrot.lane.b32.xlu0 %v375_v4, %s1632_s17 }
 0x1a7   :  { %409 = vrot.lane.b32.xlu2 %v375_v4, %s1639_s25  ;;  %403 = vrot.lane.b32.xlu1 %v375_v4, %s1638_s24 }
 0x1a8   :  { %406 = vrot.lane.b32.xlu0 %v375_v4, %s1635_s21 }
 0x1af   :  { %418 = vrot.lane.b32.xlu2 %v375_v4, %s1637_s23  ;;  %412 = vrot.lane.b32.xlu1 %v375_v4, %s1636_s22 }
 0x1b0   :  { %415 = vrot.lane.b32.xlu0 %v375_v4, %s1640_s26  ;;  %v1502_v4 = vld [vmem:[#allocation6 + $0x10] sm:$0xff] }
 0x1b1   :  { %835 = vmatpush.bf16.msrb.mxu0 %v1502_v4 }
 0x1b7   :  { %463 = vrot.lane.b32.xlu1 %v456_v8, %s1648_s13  ;;  %460 = vrot.lane.b32.xlu2 %v456_v8, %s1647_s12 }
 0x1b8   :  { %457 = vrot.lane.b32.xlu0 %v456_v8, %s1646_s11 }
 0x1bf   :  { %472 = vrot.lane.b32.xlu1 %v456_v8, %s1645_s10  ;;  %469 = vrot.lane.b32.xlu2 %v456_v8, %s1644_s30 }
 0x1c0   :  { %466 = vrot.lane.b32.xlu0 %v456_v8, %s1643_s29 }
 0x1c7   :  { %481 = vrot.lane.b32.xlu1 %v456_v8, %s1642_s28  ;;  %478 = vrot.lane.b32.xlu2 %v456_v8, %s1632_s17 }
 0x1c8   :  { %475 = vrot.lane.b32.xlu0 %v456_v8, %s1641_s27 }
 0x1cf   :  { %490 = vrot.lane.b32.xlu1 %v456_v8, %s1639_s25  ;;  %487 = vrot.lane.b32.xlu2 %v456_v8, %s1635_s21 }
 0x1d0   :  { %484 = vrot.lane.b32.xlu0 %v456_v8, %s1638_s24 }
 0x1d7   :  { %496 = vrot.lane.b32.xlu1 %v456_v8, %s1640_s26  ;;  %499 = vrot.lane.b32.xlu2 %v456_v8, %s1637_s23 }
 0x1d8   :  { %493 = vrot.lane.b32.xlu0 %v456_v8, %s1636_s22 }
 0x1e9   :  { %v383_v9 = vpop.permute.xlu2 %382 }
 0x1f1   :  { %v392_v10 = vpop.permute.xlu2 %391 }
 0x1f9   :  { %v401_v13 = vpop.permute.xlu2 %400 }
 0x201   :  { %v380_v11 = vpop.permute.xlu1 %379  ;;  %v1837_v16 = vpop.permute.xlu2 %409 }
 0x202   :  { %v377_v12 = vpop.permute.xlu0 %376 }
 0x203   :  { %v422_v24 = vsel %vm421_vm9, %v370_v3, %v377_v12  ;;  %v1520_v3 = vld [vmem:[#allocation6 + $0xa0] sm:$0xff]  ;;  %v1519_v12 = vld [vmem:[#allocation6 + $0x98] sm:$0xff] }
 0x204   :  { %v424_v27 = vsel %vm423_vm10, %v422_v24, %v380_v11  ;;  %948 = vmatpush.bf16.msrb.mxu1 %v1520_v3  ;;  %v1512_v11 = vld [vmem:[#allocation6 + $0x60] sm:$0xff]  ;;  %v1510_v24 = vld [vmem:[#allocation6 + $0x50] sm:$0xff] }
 0x205   :  { %v426_v29 = vsel %vm425_vm11, %v424_v27, %v383_v9  ;;  %754 = vmatpush.bf16.msra.mxu3 %v1512_v11 }
 0x208   :  { %949 = vmatpush.bf16.msrb.mxu1 %v1519_v12 }
 0x209   :  { %v386_v14 = vpop.permute.xlu1 %385  ;;  %v1839_v20 = vpop.permute.xlu2 %418 }
 0x20a   :  { %v389_v15 = vpop.permute.xlu0 %388  ;;  %v428_v31 = vsel %vm2080_vm12, %v426_v29, %v386_v14 }
 0x20b   :  { %v430_v32 = vsel %vm2081_vm13, %v428_v31, %v389_v15 }
 0x20c   :  { %v432_v36 = vsel %vm431_vm14, %v430_v32, %v392_v10 }
 0x211   :  { %v395_v17 = vpop.permute.xlu1 %394  ;;  %v461_v25 = vpop.permute.xlu2 %460 }
 0x212   :  { %v398_v18 = vpop.permute.xlu0 %397  ;;  %v434_v38 = vsel %vm2082_vm15, %v432_v36, %v395_v17  ;;  %v1511_v17 = vld [vmem:[#allocation6 + $0x58] sm:$0xff] }
 0x213   :  { %v435_v44 = vsel %vm119_vm0, %v434_v38, %v398_v18  ;;  %v1518_v18 = vld [vmem:[#allocation6 + $0x90] sm:$0xff]  ;;  %755 = vmatpush.bf16.msra.mxu3 %v1511_v17 }
 0x214   :  { %v437_v50 = vsel %vm436_vm5, %v435_v44, %v401_v13  ;;  %v1501_v13 = vld [vmem:[#allocation6 + $0x8] sm:$0xff]  ;;  %950 = vmatpush.bf16.msrb.mxu1 %v1518_v18  ;;  %v1508_v44 = vld [vmem:[#allocation6 + $0x40] sm:$0xff] }
 0x215   :  { %836 = vmatpush.bf16.msrb.mxu0 %v1501_v13 }
 0x217   :  { %756 = vmatpush.bf16.msra.mxu3 %v1510_v24 }
 0x219   :  { %v404_v19 = vpop.permute.xlu1 %403  ;;  %v470_v33 = vpop.permute.xlu2 %469 }
 0x21a   :  { %v407_v21 = vpop.permute.xlu0 %406  ;;  %v439_v55 = vsel %vm438_vm6, %v437_v50, %v404_v19  ;;  %v1500_v19 = vld [vmem:[#allocation6] sm:$0xff] }
 0x21b   :  { %v441_v62 = vsel %vm440_vm7, %v439_v55, %v407_v21  ;;  %837 = vmatpush.bf16.msrb.mxu0 %v1500_v19 }
 0x21c   :  { %v443_v5 = vsel %vm2086_vm8, %v441_v62, %v1837_v16 }
 0x221   :  { %v1841_v22 = vpop.permute.xlu1 %412  ;;  %v479_v54 = vpop.permute.xlu2 %478 }
 0x222   :  { %v1843_v23 = vpop.permute.xlu0 %415 }
 0x229   :  { %v464_v28 = vpop.permute.xlu1 %463  ;;  %v488_v9 = vpop.permute.xlu2 %487 }
 0x22a   :  { %v458_v30 = vpop.permute.xlu0 %457 }
 0x22b   :  { %v502_v35 = vsel %vm421_vm9, %v373_v7, %v458_v30 }
 0x22c   :  { %v503_v39 = vsel %vm423_vm10, %v502_v35, %v461_v25  ;;  %v1517_v25 = vld [vmem:[#allocation6 + $0x88] sm:$0xff] }
 0x22d   :  { %v504_v45 = vsel %vm425_vm11, %v503_v39, %v464_v28  ;;  %951 = vmatpush.bf16.msrb.mxu1 %v1517_v25 }
 0x231   :  { %v473_v37 = vpop.permute.xlu1 %472  ;;  %v500_v30 = vpop.permute.xlu2 %499  ;;  %952 = vmatpush.bf16.msrb.mxu1 %v1516_v34 }
 0x232   :  { %v467_v41 = vpop.permute.xlu0 %466 }
 0x233   :  { %v505_v46 = vsel %vm2080_vm12, %v504_v45, %v467_v41  ;;  %vm2085_vm12 = vcmask 850944  }
 0x234   :  { %v506_v56 = vsel %vm2081_vm13, %v505_v46, %v470_v33  ;;  %v445_v6 = vsel %vm2085_vm12, %v443_v5, %v1841_v22  ;;  %vm2084_vm13 = vcmask 916480   ;;  %v598_v5 = vld [vmem:[#allocation2 + $0xc] sm:$0xf] }
 0x235   :  { %v507_v63 = vsel %vm431_vm14, %v506_v56, %v473_v37  ;;  %v447_v14 = vsel %vm2084_vm13, %v445_v6, %v1843_v23 }
 0x239   :  { %v482_v57 = vpop.permute.xlu1 %481 }
 0x23a   :  { %v476_v58 = vpop.permute.xlu0 %475 }
 0x23b   :  { %v508_v1 = vsel %vm2082_vm15, %v507_v63, %v476_v58  ;;  %vm2083_vm15 = vcmask 982016   ;;  %v595_v63 = vld [vmem:[#allocation2 + $0x8] sm:$0x1] }
 0x23c   :  { %v509_v7 = vsel %vm119_vm0, %v508_v1, %v479_v54  ;;  %v449_v21 = vsel %vm2083_vm15, %v447_v14, %v1839_v20  ;;  %v1509_v20 = vld [vmem:[#allocation6 + $0x48] sm:$0xff]  ;;  %v602_v14 = vld [vmem:[#allocation2 + $0x14] sm:$0x1] }
 0x23d   :  { %v510_v15 = vsel %vm436_vm5, %v509_v7, %v482_v57  ;;  %v450_v23 = vperm.slane %v449_v21, 0  ;;  %757 = vmatpush.bf16.msra.mxu3 %v1509_v20  ;;  %v591_v57 = vld [vmem:[#allocation2] sm:$0xf] }
 0x23f   :  { %v451_v32 = vmul.f32 %v450_v23, %v1767_v52  ;;  %v452_v35 = vmul.f32 %v450_v23, %v1765_v51  ;;  %v453_v36 = vmul.f32 %v450_v23, %v1769_v53  ;;  %v454_v37 = vmul.f32 %v450_v23, %v1780_v0 }
 0x241   :  { %v491_v8 = vpop.permute.xlu1 %490  ;;  %758 = vmatpush.bf16.msra.mxu3 %v1508_v44 }
 0x242   :  { %v485_v10 = vpop.permute.xlu0 %484 }
 0x243   :  { %v511_v16 = vsel %vm438_vm6, %v510_v15, %v485_v10 }
 0x244   :  { %v512_v22 = vsel %vm440_vm7, %v511_v16, %v488_v9 }
 0x245   :  { %v513_v27 = vsel %vm2086_vm8, %v512_v22, %v491_v8 }
 0x249   :  { %v497_v26 = vpop.permute.xlu1 %496 }
 0x24a   :  { %v494_v28 = vpop.permute.xlu0 %493 }
 0x24b   :  { %v514_v29 = vsel %vm2085_vm12, %v513_v27, %v494_v28 }
 0x24c   :  { %v515_v31 = vsel %vm2084_vm13, %v514_v29, %v497_v26  ;;  %vm589_vm13 = vcmask 1043456  }
 0x24d   :  { %v516_v33 = vsel %vm2083_vm15, %v515_v31, %v500_v30  ;;  %vm547_vm15 = vsmask.f32 4368  ;;  %vm1889_vm8 = vmand %vm589_vm13, %vm535_vm4  ;;  %vm856_vm4 = vcmask 1046532   ;;  %vm627_vm13 = vsmask.f32 3328 }
 0x24e   :  { %v517_v38 = vperm.slane %v516_v33, 0  ;;  %vm1884_vm12 = vmor %vm527_vm2, %vm547_vm15  ;;  %vm855_vm2 = vcmask 1042432   ;;  %vm628_vm15 = vsmask.f32 7440 }
 0x250   :  { %v518_v39 = vadd.f32 %v517_v38, %v451_v32  ;;  %v519_v41 = vadd.f32 %v517_v38, %v452_v35  ;;  %v520_v42 = vadd.f32 %v517_v38, %v453_v36  ;;  %v521_v43 = vadd.f32 %v517_v38, %v454_v37 }
 0x252   :  { %v522_v45 = vmax.f32 %v518_v39, 0.0  ;;  %v523_v46 = vmax.f32 %v519_v41, 0.0  ;;  %v524_v52 = vmax.f32 %v520_v42, 0.0  ;;  %v525_v47 = vmax.f32 %v521_v43, 0.0 }
 0x254   :  { %v543_v48 = vpack.c.bf16 %v522_v45, %v522_v45  ;;  %v544_v49 = vpack.c.bf16 %v523_v46, %v523_v46  ;;  %v545_v50 = vpack.c.bf16 %v524_v52, %v524_v52  ;;  %v546_v51 = vpack.c.bf16 %v525_v47, %v525_v47 }
 0x256   :  { %v550_v53 = vshrl.u32 %v543_v48, 16  ;;  %v558_v0 = vshrl.u32 %v544_v49, 16  ;;  %v567_v54 = vshrl.u32 %v545_v50, 16  ;;  %v575_v55 = vshrl.u32 %v546_v51, 16 }
 0x257   :  { %v553_v59 = vshll.u32 %v543_v48, 16  ;;  %v561_v61 = vshll.u32 %v544_v49, 16  ;;  %v570_v2 = vshll.u32 %v545_v50, 16  ;;  %v578_v4 = vshll.u32 %v546_v51, 16 }
 0x258   :  { %v552_v58 = vrot.slane %v550_v53, 7  ;;  %v560_v60 = vrot.slane %v558_v0, 7  ;;  %v569_v1 = vrot.slane %v567_v54, 7  ;;  %v577_v3 = vrot.slane %v575_v55, 7 }
 0x25a   :  { %v555_v6 = vor.u32 %v553_v59, %v552_v58  ;;  %v556_v7 = vrot.slane %v552_v58, 4  ;;  %v563_v8 = vor.u32 %v561_v61, %v560_v60  ;;  %v565_v9 = vrot.slane %v560_v60, 4 }
 0x25b   :  { %v572_v10 = vor.u32 %v570_v2, %v569_v1  ;;  %v573_v11 = vrot.slane %v569_v1, 4  ;;  %v580_v12 = vor.u32 %v578_v4, %v577_v3  ;;  %v582_v13 = vrot.slane %v577_v3, 4 }
 0x25c   :  { %v564_v15 = vsel %vm1884_vm12, %v556_v7, %v563_v8  ;;  %v592_v16 = vsel %vm1889_vm8, %v555_v6, %v591_v57  ;;  %v596_v17 = vsel %vm1755_vm3, %v565_v9, %v595_v63 }
 0x25d   :  { %593 = vst [vmem:[#allocation2] sm:$0xf] %v592_v16  ;;  %v599_v18 = vsel %vm1889_vm8, %v572_v10, %v598_v5  ;;  %v581_v19 = vsel %vm1884_vm12, %v573_v11, %v580_v12  ;;  %v603_v21 = vsel %vm1755_vm3, %v582_v13, %v602_v14  ;;  %vm1905_vm8 = vmor %vm855_vm2, %vm856_vm4  ;;  %vm2097_vm4 = vcmask 261120  }
 0x25e   :  { %594 = vst [vmem:[#allocation2 + $0x4] sm:$0xf] %v564_v15  ;;  %vm1915_vm3 = vmor %vm627_vm13, %vm628_vm15  ;;  %vm2098_vm13 = vcmask 326656   ;;  %vm2099_vm15 = vcmask 457728  }
 0x25f   :  { %597 = vst [vmem:[#allocation2 + $0x8] sm:$0x1] %v596_v17 }
 0x260   :  { %600 = vst [vmem:[#allocation2 + $0xc] sm:$0xf] %v599_v18 }
 0x261   :  { %601 = vst [vmem:[#allocation2 + $0x10] sm:$0xf] %v581_v19 }
 0x262   :  { %604 = vst [vmem:[#allocation2 + $0x14] sm:$0x1] %v603_v21 }
 0x264   :  { %v849_v22 = vld [vmem:[#allocation2] sm:$0xe] }
 0x265   :  { %v605_v24 = vld [vmem:[#allocation2] sm:$0xf]  ;;  %v606_v23 = vld [vmem:[#allocation2 + $0x4] sm:$0xf]  ;;  %v1434_v27 = vrot.slane %v849_v22, 9 }
 0x266   :  { %v1498_v25 = vld [vmem:[#allocation2] sm:$0xff]  ;;  %v631_v28 = vshrl.u32 %v605_v24, 16  ;;  %v634_v29 = vshll.u32 %v605_v24, 16  ;;  %v625_v40 = vld [vmem:[#allocation2 + $0x8] sm:$0x1]  ;;  %v860_v30 = vrot.slane %v606_v23, 5 }
 0x267   :  { %v640_v31 = vshll.u32 %v606_v23, 16  ;;  %v644_v20 = vshrl.u32 %v606_v23, 16  ;;  %838 = vmatmul.bf16.vlgmr.msrb.gmra.mxu0 %v1498_v25  ;;  %v863_v32 = vrot.slane %v625_v40, 5  ;;  %v650_v35 = vshll.u32 %v625_v40, 16  ;;  %v607_v43 = vld [vmem:[#allocation2 + $0xc] sm:$0xf] }
 0x268   :  { %v633_v33 = vrot.slane %v631_v28, 4  ;;  %v636_v34 = vrot.slane %v634_v29, 5  ;;  %v861_v36 = vsel %vm1905_vm8, %v1434_v27, %v860_v30  ;;  %v862_v37 = vrot.slane %v860_v30, 4  ;;  %v608_v42 = vld [vmem:[#allocation2 + $0x10] sm:$0xf] }
 0x269   :  { %v642_v38 = vrot.slane %v640_v31, 5  ;;  %v646_v39 = vrot.slane %v644_v20, 4  ;;  %v889_v45 = vunpack.c.l.b16 %v861_v36  ;;  %v655_v49 = vshrl.u32 %v607_v43, 16  ;;  %v626_v2 = vld [vmem:[#allocation2 + $0x14] sm:$0x1]  ;;  %v1499_v11 = vld [vmem:[#allocation2 + $0xc] sm:$0xff] }
 0x26a   :  { %v637_v41 = vor.u32 %v636_v34, %v633_v33  ;;  %v864_v44 = vsel %vm1905_vm8, %v862_v37, %v863_v32  ;;  %v658_v50 = vshll.u32 %v607_v43, 16  ;;  %v652_v53 = vrot.slane %v650_v35, 5  ;;  %v850_v3 = vld [vmem:[#allocation2 + $0xc] sm:$0xe] }
 0x26b   :  { %v647_v52 = vor.u32 %v646_v39, %v642_v38  ;;  %v890_v47 = vunpack.c.l.b16 %v864_v44  ;;  %v664_v0 = vshll.u32 %v608_v42, 16  ;;  %v867_v56 = vrot.slane %v608_v42, 5 }
 0x26c   :  { %v638_v48 = vrot.slane %v637_v41, 4  ;;  %v657_v59 = vrot.slane %v655_v49, 4  ;;  %v660_v60 = vrot.slane %v658_v50, 5  ;;  %v668_v63 = vshrl.u32 %v608_v42, 16 }
 0x26d   :  { %v648_v51 = vrot.slane %v647_v52, 4  ;;  %v893_v54 = vpack.c.b16 %v890_v47, %v889_v45  ;;  %v666_v62 = vrot.slane %v664_v0, 5  ;;  %v869_v5 = vrot.slane %v867_v56, 4 }
 0x26e   :  { %v643_v55 = vsel %vm1915_vm3, %v638_v48, %v642_v38  ;;  %v670_v4 = vrot.slane %v668_v63, 4  ;;  %v661_v6 = vor.u32 %v660_v60, %v657_v59  ;;  %v1435_v8 = vrot.slane %v850_v3, 9 }
 0x26f   :  { %v653_v57 = vsel %vm1915_vm3, %v648_v51, %v652_v53  ;;  %v695_v58 = vunpack.c.l.b16 %v643_v55  ;;  %953 = vmatmul.bf16.vlgmr.msrb.gmra.mxu1 %v893_v54  ;;  %v870_v9 = vrot.slane %v626_v2, 5  ;;  %v674_v10 = vshll.u32 %v626_v2, 16 }
 0x270   :  { %v696_v61 = vunpack.c.l.b16 %v653_v57  ;;  %v671_v7 = vor.u32 %v670_v4, %v666_v62  ;;  %v662_v13 = vrot.slane %v661_v6, 4  ;;  %v868_v15 = vsel %vm1905_vm8, %v1435_v8, %v867_v56 }
 0x271   :  { %v871_v12 = vsel %vm1905_vm8, %v869_v5, %v870_v9  ;;  %v676_v16 = vrot.slane %v674_v10, 5  ;;  %v891_v21 = vunpack.c.l.b16 %v868_v15  ;;  %vm2100_vm8 = vmmov %vm2097_vm4 }
 0x272   :  { %v699_v1 = vpack.c.b16 %v696_v61, %v695_v58  ;;  %v672_v14 = vrot.slane %v671_v7, 4  ;;  %v892_v17 = vunpack.c.l.b16 %v871_v12  ;;  %v667_v18 = vsel %vm1915_vm3, %v662_v13, %v666_v62 }
 0x273   :  { %v697_v24 = vunpack.c.l.b16 %v667_v18 }
 0x274   :  { %759 = vmatmul.bf16.vlgmr.msra.gmra.mxu3 %v699_v1  ;;  %v677_v19 = vsel %vm1915_vm3, %v672_v14, %v676_v16  ;;  %v894_v22 = vpack.c.b16 %v892_v17, %v891_v21  ;;  %vm2104_vm3 = vcmask 850944  }
 0x275   :  { %v698_v25 = vunpack.c.l.b16 %v677_v19 }
 0x277   :  { %843 = vmatmul.bf16.gmra.mxu0 %v1499_v11  ;;  %v700_v23 = vpack.c.b16 %v698_v25, %v697_v24 }
 0x27f   :  { %958 = vmatmul.bf16.gmra.mxu1 %v894_v22 }
 0x284   :  { %764 = vmatmul.bf16.gmra.mxu3 %v700_v23 }
 0x2e4   :  { %v839_v27 = vpop.f32.mrf.mxu0 }
 0x2ec   :  { %v954_v28 = vpop.f32.mrf.mxu1  ;;  %v841_v26 = vpop.f32.mrf.mxu0 }
 0x2f4   :  { %v956_v40 = vpop.f32.mrf.mxu1  ;;  %v844_v31 = vpop.f32.mrf.mxu0 }
 0x2f7   :  { %v760_v29 = vpop.f32.mrf.mxu3 }
 0x2f8   :  { %v840_v34 = vadd.f32 %v839_v27, %v760_v29 }
 0x2fa   :  { %v1933_v37 = vadd.f32 %v954_v28, %v840_v34 }
 0x2fc   :  { %v959_v32 = vpop.f32.mrf.mxu1  ;;  %v846_v41 = vpop.f32.mrf.mxu0  ;;  %v977_v43 = vmul.f32 %v1933_v37, %v1933_v37 }
 0x2ff   :  { %v762_v30 = vpop.f32.mrf.mxu3 }
 0x300   :  { %v842_v20 = vadd.f32 %v841_v26, %v762_v30 }
 0x302   :  { %v1931_v36 = vadd.f32 %v956_v40, %v842_v20 }
 0x304   :  { %v978_v39 = vmul.f32 %v1931_v36, %v1931_v36  ;;  %v968_v44 = vadd.f32 %v1931_v36, %v1933_v37  ;;  %v961_v52 = vpop.f32.mrf.mxu1 }
 0x306   :  { %v981_v47 = vadd.f32 %v978_v39, %v977_v43 }
 0x307   :  { %v765_v33 = vpop.f32.mrf.mxu3 }
 0x308   :  { %v845_v35 = vadd.f32 %v844_v31, %v765_v33 }
 0x30a   :  { %v1935_v38 = vadd.f32 %v959_v32, %v845_v35 }
 0x30c   :  { %v979_v45 = vmul.f32 %v1935_v38, %v1935_v38  ;;  %v969_v48 = vadd.f32 %v968_v44, %v1935_v38 }
 0x30e   :  { %v982_v50 = vadd.f32 %v981_v47, %v979_v45  ;;  %v1526_v45 = vld [vmem:[%s2077_s7 + $0x10] sm:$0xff] }
 0x30f   :  { %v767_v42 = vpop.f32.mrf.mxu3 }
 0x310   :  { %v847_v46 = vadd.f32 %v846_v41, %v767_v42  ;;  %v1527_v42 = vld [vmem:[%s2077_s7 + $0x18] sm:$0xff] }
 0x311   :  { %1265 = vmatpush.bf16.msrb.mxu2 %v1527_v42 }
 0x312   :  { %v1946_v49 = vadd.f32 %v961_v52, %v847_v46 }
 0x314   :  { %v970_v51 = vadd.f32 %v969_v48, %v1946_v49  ;;  %v980_v53 = vmul.f32 %v1946_v49, %v1946_v49 }
 0x315   :  { %1266 = vmatpush.bf16.msrb.mxu2 %v1526_v45 }
 0x316   :  { %v971_v0 = vrot.slane %v970_v51, 4  ;;  %v983_v54 = vadd.f32 %v982_v50, %v980_v53  ;;  %v1525_v50 = vld [vmem:[%s2077_s7 + $0x8] sm:$0xff]  ;;  %v1058_v53 = vld [vmem:[%s2075_s5] sm:$0x1] }
 0x318   :  { %v972_v55 = vadd.f32 %v971_v0, %v970_v51  ;;  %v984_v56 = vrot.slane %v983_v54, 4  ;;  %v1524_v0 = vld [vmem:[%s2077_s7] sm:$0xff] }
 0x319   :  { %1267 = vmatpush.bf16.msrb.mxu2 %v1525_v50 }
 0x31a   :  { %v973_v57 = vrot.slane %v972_v55, 2  ;;  %v985_v58 = vadd.f32 %v984_v56, %v983_v54  ;;  %v1213_v54 = vld [vmem:[%s2070_s0 + $0x1] sm:$0xff] }
 0x31c   :  { %v974_v59 = vadd.f32 %v973_v57, %v972_v55  ;;  %v986_v60 = vrot.slane %v985_v58, 2  ;;  %v1214_v55 = vld [vmem:[%s2070_s0 + $0x9] sm:$0xff] }
 0x31d   :  { %v1217_v56 = vpack.c.bf16 %v1214_v55, %v1213_v54  ;;  %1268 = vmatpush.bf16.msrb.mxu2 %v1524_v0 }
 0x31e   :  { %v975_v61 = vrot.slane %v974_v59, 1  ;;  %v987_v62 = vadd.f32 %v986_v60, %v985_v58  ;;  %v1215_v60 = vld [vmem:[%s2070_s0 + $0x19] sm:$0xff] }
 0x320   :  { %v988_v63 = vrot.slane %v987_v62, 1  ;;  %v976_v1 = vadd.f32 %v975_v61, %v974_v59  ;;  %1484 = vmatmul.msk.bf16.vlgmr.msrb.gmra.mxu2 %vm119_vm0, %v1217_v56  ;;  %v1216_v61 = vld [vmem:[%s2070_s0 + $0x21] sm:$0xff] }
 0x322   :  { %v989_v2 = vadd.f32 %v988_v63, %v987_v62  ;;  %v1218_v62 = vpack.c.bf16 %v1216_v61, %v1215_v60 }
 0x324   :  { %v990_v3 = vsel %vm284_vm1, %v976_v1, %v989_v2  ;;  %v1076_v1 = vld [vmem:[%s2076_s6] sm:$0x1] }
 0x325   :  { %1000 = vrot.lane.b32.xlu2 %v990_v3, %s1636_s22  ;;  %996 = vrot.lane.b32.xlu1 %v990_v3, %s1640_s26 }
 0x326   :  { %992 = vrot.lane.b32.xlu0 %v990_v3, %s1637_s23 }
 0x32d   :  { %1012 = vrot.lane.b32.xlu2 %v990_v3, %s1638_s24  ;;  %1008 = vrot.lane.b32.xlu1 %v990_v3, %s1635_s21 }
 0x32e   :  { %1004 = vrot.lane.b32.xlu0 %v990_v3, %s1639_s25 }
 0x330   :  { %1485 = vmatmul.msk.bf16.gmra.mxu2 %vm119_vm0, %v1218_v62 }
 0x335   :  { %1024 = vrot.lane.b32.xlu2 %v990_v3, %s1641_s27  ;;  %1020 = vrot.lane.b32.xlu1 %v990_v3, %s1632_s17 }
 0x336   :  { %1016 = vrot.lane.b32.xlu0 %v990_v3, %s1642_s28 }
 0x33d   :  { %1036 = vrot.lane.b32.xlu2 %v990_v3, %s1643_s29  ;;  %1032 = vrot.lane.b32.xlu1 %v990_v3, %s1644_s30 }
 0x33e   :  { %1028 = vrot.lane.b32.xlu0 %v990_v3, %s1645_s10 }
 0x345   :  { %1048 = vrot.lane.b32.xlu2 %v990_v3, %s1646_s11  ;;  %1044 = vrot.lane.b32.xlu1 %v990_v3, %s1647_s12 }
 0x346   :  { %1040 = vrot.lane.b32.xlu0 %v990_v3, %s1648_s13 }
 0x37f   :  { %v1001_v4 = vpop.permute.xlu2 %1000 }
 0x387   :  { %v1013_v9 = vpop.permute.xlu2 %1012 }
 0x38f   :  { %v1025_v17 = vpop.permute.xlu2 %1024 }
 0x397   :  { %v997_v5 = vpop.permute.xlu1 %996  ;;  %v1037_v27 = vpop.permute.xlu2 %1036 }
 0x398   :  { %v993_v6 = vpop.permute.xlu0 %992 }
 0x399   :  { %v995_v7 = vadd.f32 %v993_v6, %v990_v3 }
 0x39b   :  { %v999_v8 = vadd.f32 %v997_v5, %v995_v7 }
 0x39d   :  { %v1003_v11 = vadd.f32 %v1001_v4, %v999_v8 }
 0x39f   :  { %v1009_v10 = vpop.permute.xlu1 %1008  ;;  %v1049_v20 = vpop.permute.xlu2 %1048 }
 0x3a0   :  { %v1005_v12 = vpop.permute.xlu0 %1004 }
 0x3a1   :  { %v1007_v13 = vadd.f32 %v1005_v12, %v1003_v11 }
 0x3a3   :  { %v1011_v14 = vadd.f32 %v1009_v10, %v1007_v13 }
 0x3a5   :  { %v1015_v16 = vadd.f32 %v1013_v9, %v1011_v14 }
 0x3a7   :  { %v1021_v15 = vpop.permute.xlu1 %1020 }
 0x3a8   :  { %v1017_v18 = vpop.permute.xlu0 %1016 }
 0x3a9   :  { %v1019_v19 = vadd.f32 %v1017_v18, %v1015_v16 }
 0x3ab   :  { %v1023_v21 = vadd.f32 %v1021_v15, %v1019_v19 }
 0x3ad   :  { %v1027_v22 = vadd.f32 %v1025_v17, %v1023_v21 }
 0x3af   :  { %v1033_v24 = vpop.permute.xlu1 %1032 }
 0x3b0   :  { %v1029_v25 = vpop.permute.xlu0 %1028 }
 0x3b1   :  { %v1031_v23 = vadd.f32 %v1029_v25, %v1027_v22 }
 0x3b3   :  { %v1035_v28 = vadd.f32 %v1033_v24, %v1031_v23 }
 0x3b5   :  { %v1039_v29 = vadd.f32 %v1037_v27, %v1035_v28 }
 0x3b7   :  { %v1045_v30 = vpop.permute.xlu1 %1044 }
 0x3b8   :  { %v1041_v26 = vpop.permute.xlu0 %1040 }
 0x3b9   :  { %v1043_v40 = vadd.f32 %v1041_v26, %v1039_v29 }
 0x3bb   :  { %v1047_v31 = vadd.f32 %v1045_v30, %v1043_v40  ;;  %v1270_v40 = vpop.f32.mrf.mxu2 }
 0x3bd   :  { %v1051_v32 = vadd.f32 %v1049_v20, %v1047_v31 }
 0x3bf   :  { %v1052_v33 = vmul.f32 0.001953125, %v1051_v32 }
 0x3c1   :  { %v1053_v34 = vmul.f32 %v1052_v33, %v1052_v33 }
 0x3c3   :  { %v1055_v35 = vrot.slane %v1053_v34, 7 }
 0x3c5   :  { %v1057_v39 = vsub.f32 %v1052_v33, %v1055_v35 }
 0x3c7   :  { %v1059_v41 = vadd.f32 1e-05, %v1057_v39 }
 0x3c9   :  { %1551 = vrsqrt.f32 %v1059_v41  ;;  %vm1066_vm12 = vweird.f32 %v1059_v41 }
 0x3cf   :  { %v1552_v43 = vpop.eup %1551 }
 0x3d0   :  { %v1061_v44 = vmul.f32 %v1552_v43, %v1059_v41  ;;  %vm1067_vm1 = vweird.f32 %v1552_v43 }
 0x3d1   :  { %vm1068_vm2 = vmor %vm1066_vm12, %vm1067_vm1  ;;  %vm2105_vm1 = vcmask 916480  }
 0x3d2   :  { %v1062_v46 = vmul.f32 %v1552_v43, %v1061_v44  ;;  %v1272_v44 = vpop.f32.mrf.mxu2 }
 0x3d4   :  { %v1063_v52 = vmul.f32 0.5, %v1062_v46 }
 0x3d6   :  { %v1064_v47 = vsub.f32 1.5, %v1063_v52 }
 0x3d8   :  { %v1065_v48 = vmul.f32 %v1552_v43, %v1064_v47 }
 0x3da   :  { %v1069_v51 = vsel %vm1068_vm2, %v1552_v43, %v1065_v48 }
 0x3db   :  { %1071 = vst [vmem:[#allocation1] sm:$0xff] %v1069_v51 }
 0x3e2   :  { %v1073_v57 = vld [vmem:[#allocation1 + $0x1] ss:$9 sm:$0xff] }
 0x3e3   :  { %v1075_v58 = vmul.f32 %v1073_v57, %v1058_v53 }
 0x3e5   :  { %v1080_v59 = vperm.slane %v1075_v58, 0  ;;  %v1077_v63 = vmul.f32 %v1075_v58, %v1052_v33 }
 0x3e7   :  { %1087 = vrot.lane.b32.xlu2 %v1080_v59, %s1648_s13  ;;  %1084 = vrot.lane.b32.xlu1 %v1080_v59, %s1647_s12  ;;  %v1078_v2 = vsub.f32 %v1076_v1, %v1077_v63 }
 0x3e8   :  { %1081 = vrot.lane.b32.xlu0 %v1080_v59, %s1646_s11 }
 0x3e9   :  { %v1147_v3 = vperm.slane %v1078_v2, 0 }
 0x3ef   :  { %1096 = vrot.lane.b32.xlu2 %v1080_v59, %s1645_s10  ;;  %1093 = vrot.lane.b32.xlu1 %v1080_v59, %s1644_s30 }
 0x3f0   :  { %1090 = vrot.lane.b32.xlu0 %v1080_v59, %s1643_s29 }
 0x3f7   :  { %1105 = vrot.lane.b32.xlu2 %v1080_v59, %s1642_s28  ;;  %1102 = vrot.lane.b32.xlu1 %v1080_v59, %s1632_s17 }
 0x3f8   :  { %1099 = vrot.lane.b32.xlu0 %v1080_v59, %s1641_s27 }
 0x3ff   :  { %1114 = vrot.lane.b32.xlu2 %v1080_v59, %s1639_s25  ;;  %1117 = vrot.lane.b32.xlu1 %v1080_v59, %s1636_s22 }
 0x400   :  { %1108 = vrot.lane.b32.xlu0 %v1080_v59, %s1638_s24 }
 0x407   :  { %1123 = vrot.lane.b32.xlu2 %v1080_v59, %s1637_s23  ;;  %1148 = vrot.lane.b32.xlu1 %v1147_v3, %s1646_s11 }
 0x408   :  { %1111 = vrot.lane.b32.xlu0 %v1080_v59, %s1635_s21 }
 0x40f   :  { %1151 = vrot.lane.b32.xlu2 %v1147_v3, %s1647_s12  ;;  %1157 = vrot.lane.b32.xlu1 %v1147_v3, %s1643_s29 }
 0x410   :  { %1120 = vrot.lane.b32.xlu0 %v1080_v59, %s1640_s26  ;;  %v1275_v59 = vpop.f32.mrf.mxu2 }
 0x417   :  { %1160 = vrot.lane.b32.xlu2 %v1147_v3, %s1644_s30  ;;  %1166 = vrot.lane.b32.xlu1 %v1147_v3, %s1641_s27 }
 0x418   :  { %1154 = vrot.lane.b32.xlu0 %v1147_v3, %s1648_s13 }
 0x41f   :  { %1169 = vrot.lane.b32.xlu2 %v1147_v3, %s1632_s17  ;;  %1172 = vrot.lane.b32.xlu1 %v1147_v3, %s1642_s28 }
 0x420   :  { %1163 = vrot.lane.b32.xlu0 %v1147_v3, %s1645_s10 }
 0x427   :  { %1178 = vrot.lane.b32.xlu2 %v1147_v3, %s1635_s21  ;;  %1181 = vrot.lane.b32.xlu1 %v1147_v3, %s1639_s25  ;;  %s1294_s21 = sshll.u32 %s2079_s9, 4  ;;  %s1295_s21 = int_to_ptr.hbm [resolvable:$true] %s1294_s21 }
 0x428   :  { %1175 = vrot.lane.b32.xlu0 %v1147_v3, %s1638_s24  ;;  %s1650_s24 = smov 128  }
 0x42f   :  { %1190 = vrot.lane.b32.xlu2 %v1147_v3, %s1637_s23  ;;  %1187 = vrot.lane.b32.xlu1 %v1147_v3, %s1640_s26 }
 0x430   :  { %1184 = vrot.lane.b32.xlu0 %v1147_v3, %s1636_s22  ;;  %s1649_s22 = smov [#allocation8]  }
 0x431   :  { %s1292_s23 = sshll.u32 %s1649_s22, 4  ;;  %s1293_s23 = int_to_ptr.vmem [resolvable:$true] %s1292_s23 }
 0x441   :  { %v1088_v4 = vpop.permute.xlu2 %1087 }
 0x449   :  { %v1097_v5 = vpop.permute.xlu2 %1096 }
 0x451   :  { %v1106_v8 = vpop.permute.xlu2 %1105 }
 0x459   :  { %v1085_v6 = vpop.permute.xlu1 %1084  ;;  %v1115_v11 = vpop.permute.xlu2 %1114 }
 0x45a   :  { %v1082_v7 = vpop.permute.xlu0 %1081 }
 0x45b   :  { %v1126_v21 = vsel %vm421_vm9, %v1075_v58, %v1082_v7 }
 0x45c   :  { %v1127_v22 = vsel %vm423_vm10, %v1126_v21, %v1085_v6 }
 0x45d   :  { %v1128_v23 = vsel %vm425_vm11, %v1127_v22, %v1088_v4  ;;  %v1548_v4 = vld [vmem:[%s2078_s8] ss:$0 sm:$0xff] }
 0x461   :  { %v1094_v9 = vpop.permute.xlu1 %1093  ;;  %v1124_v15 = vpop.permute.xlu2 %1123 }
 0x462   :  { %v1091_v10 = vpop.permute.xlu0 %1090 }
 0x463   :  { %v1129_v27 = vsel %vm2097_vm4, %v1128_v23, %v1091_v10 }
 0x464   :  { %v1130_v29 = vsel %vm2098_vm13, %v1129_v27, %v1094_v9 }
 0x465   :  { %v1131_v20 = vsel %vm431_vm14, %v1130_v29, %v1097_v5 }
 0x469   :  { %v1103_v12 = vpop.permute.xlu1 %1102  ;;  %v1152_v19 = vpop.permute.xlu2 %1151 }
 0x46a   :  { %v1100_v13 = vpop.permute.xlu0 %1099 }
 0x46b   :  { %v1132_v33 = vsel %vm2099_vm15, %v1131_v20, %v1100_v13  ;;  %v1277_v13 = vpop.f32.mrf.mxu2 }
 0x46c   :  { %v1133_v35 = vsel %vm119_vm0, %v1132_v33, %v1103_v12 }
 0x46d   :  { %v1134_v43 = vsel %vm436_vm5, %v1133_v35, %v1106_v8 }
 0x471   :  { %v1118_v14 = vpop.permute.xlu1 %1117  ;;  %v1161_v28 = vpop.permute.xlu2 %1160 }
 0x472   :  { %v1109_v16 = vpop.permute.xlu0 %1108 }
 0x473   :  { %v1135_v52 = vsel %vm438_vm6, %v1134_v43, %v1109_v16  ;;  %v1273_v16 = vadd.f32 %v1548_v4, %v1272_v44 }
 0x479   :  { %v1149_v17 = vpop.permute.xlu1 %1148  ;;  %v1170_v41 = vpop.permute.xlu2 %1169 }
 0x47a   :  { %v1112_v18 = vpop.permute.xlu0 %1111  ;;  %v1193_v26 = vsel %vm421_vm9, %v1078_v2, %v1149_v17  ;;  %vm2101_vm9 = vmmov %vm2098_vm13  ;;  %v1276_v17 = vadd.f32 %v1548_v4, %v1275_v59 }
 0x47b   :  { %v1194_v32 = vsel %vm423_vm10, %v1193_v26, %v1152_v19  ;;  %v1136_v48 = vsel %vm440_vm7, %v1135_v52, %v1112_v18  ;;  %vm2102_vm10 = vmmov %vm2099_vm15 }
 0x481   :  { %v1158_v24 = vpop.permute.xlu1 %1157  ;;  %v1179_v55 = vpop.permute.xlu2 %1178 }
 0x482   :  { %v1121_v25 = vpop.permute.xlu0 %1120 }
 0x489   :  { %v1167_v30 = vpop.permute.xlu1 %1166  ;;  %v1191_v6 = vpop.permute.xlu2 %1190 }
 0x48a   :  { %v1155_v31 = vpop.permute.xlu0 %1154 }
 0x48b   :  { %v1195_v34 = vsel %vm425_vm11, %v1194_v32, %v1155_v31  ;;  %vm2103_vm11 = vcmask 785408  }
 0x48c   :  { %v1196_v39 = vsel %vm2100_vm8, %v1195_v34, %v1158_v24  ;;  %v1137_v51 = vsel %vm2103_vm11, %v1136_v48, %v1115_v11  ;;  %vm2107_vm12 = vmmov %vm2103_vm11  ;;  %v1278_v24 = vadd.f32 %v1548_v4, %v1277_v13 }
 0x48d   :  { %v1197_v46 = vsel %vm2101_vm9, %v1196_v39, %v1161_v28  ;;  %v1138_v54 = vsel %vm2104_vm3, %v1137_v51, %v1118_v14 }
 0x48e   :  { %v1139_v57 = vsel %vm2105_vm1, %v1138_v54, %v1121_v25 }
 0x491   :  { %v1173_v42 = vpop.permute.xlu1 %1172 }
 0x492   :  { %v1164_v45 = vpop.permute.xlu0 %1163 }
 0x493   :  { %v1198_v47 = vsel %vm431_vm14, %v1197_v46, %v1164_v45  ;;  %vm2106_vm14 = vcmask 982016  }
 0x494   :  { %v1199_v50 = vsel %vm2102_vm10, %v1198_v47, %v1167_v30  ;;  %v1140_v61 = vsel %vm2106_vm14, %v1139_v57, %v1124_v15  ;;  %v1271_v15 = vadd.f32 %v1548_v4, %v1270_v40 }
 0x495   :  { %v1200_v53 = vsel %vm119_vm0, %v1199_v50, %v1170_v41  ;;  %v1141_v63 = vperm.slane %v1140_v61, 0  ;;  %vm2108_vm0 = vmmov %vm2104_vm3 }
 0x496   :  { %v1201_v58 = vsel %vm436_vm5, %v1200_v53, %v1173_v42  ;;  %vm2109_vm5 = vmmov %vm2105_vm1 }
 0x497   :  { %v1142_v8 = vmul.f32 %v1141_v63, %v1933_v37  ;;  %v1143_v10 = vmul.f32 %v1141_v63, %v1931_v36  ;;  %v1144_v11 = vmul.f32 %v1141_v63, %v1935_v38  ;;  %v1145_v12 = vmul.f32 %v1141_v63, %v1946_v49 }
 0x499   :  { %v1182_v0 = vpop.permute.xlu1 %1181 }
 0x49a   :  { %v1176_v56 = vpop.permute.xlu0 %1175 }
 0x49b   :  { %v1202_v60 = vsel %vm438_vm6, %v1201_v58, %v1176_v56  ;;  %vm2110_vm6 = vmmov %vm2106_vm14 }
 0x49c   :  { %v1203_v62 = vsel %vm440_vm7, %v1202_v60, %v1179_v55 }
 0x49d   :  { %v1204_v2 = vsel %vm2107_vm12, %v1203_v62, %v1182_v0 }
 0x4a1   :  { %v1188_v1 = vpop.permute.xlu1 %1187 }
 0x4a2   :  { %v1185_v3 = vpop.permute.xlu0 %1184 }
 0x4a3   :  { %v1205_v5 = vsel %vm2108_vm0, %v1204_v2, %v1185_v3 }
 0x4a4   :  { %v1206_v7 = vsel %vm2109_vm5, %v1205_v5, %v1188_v1 }
 0x4a5   :  { %v1207_v9 = vsel %vm2110_vm6, %v1206_v7, %v1191_v6 }
 0x4a6   :  { %v1208_v14 = vperm.slane %v1207_v9, 0 }
 0x4a8   :  { %v1209_v18 = vadd.f32 %v1208_v14, %v1142_v8  ;;  %v1210_v19 = vadd.f32 %v1208_v14, %v1143_v10  ;;  %v1211_v21 = vadd.f32 %v1208_v14, %v1144_v11  ;;  %v1212_v22 = vadd.f32 %v1208_v14, %v1145_v12 }
 0x4aa   :  { %v1280_v37 = vadd.f32 %v1271_v15, %v1209_v18  ;;  %v1281_v36 = vadd.f32 %v1273_v16, %v1210_v19  ;;  %v1282_v25 = vadd.f32 %v1276_v17, %v1211_v21  ;;  %v1283_v38 = vadd.f32 %v1278_v24, %v1212_v22 }
 0x4ac   :  { %1284 = vst [vmem:[#allocation8] sm:$0xff] %v1280_v37 }
 0x4ad   :  { %1285 = vst [vmem:[#allocation8 + $0x8] sm:$0xff] %v1281_v36 }
 0x4ae   :  { %1286 = vst [vmem:[#allocation8 + $0x10] sm:$0xff] %v1282_v25 }
 0x4af   :  { %1287 = vst [vmem:[#allocation8 + $0x18] sm:$0xff] %v1283_v38 }
 0x4b0   :  { %1300 = dma.vmem_to_hbm [thread:$0]  %s1293_s23, 512, %s1295_s21, [#allocation5], %s1650_s24, %s1650_s24, %s1646_s11  }
 0x4b1   :  { %1629 = dma.done.wait [#allocation5], 512  }
 0x4b2   :  { %1630 = vsyncadd [#allocation5], 4294966784 }
 0x4b3   :  { %1305 = vsyncpa [#allocation4], 1 }
 0x4b4   :  { %1306 = vsyncpa [#allocation7], 1 }
 0x4b5   :  { %1307 = vsyncpa [#allocation5], 1 }

</bundles_post_ra>
